<compile_context>
chip_gen: v6e
topology: v6e:2x2x1
jax: 0.10.0
libtpu: 0.0.40
codegen_flags: <defaults>
</compile_context>

<pallas_src>
import jax
import jax.numpy as jnp
from jax import lax
from jax.experimental import pallas as pl
from jax.experimental.pallas import tpu as pltpu

EPS = 1e-5


# ----------------------------------------------------------------------------
# Fused kernel: 1x1 conv -> (3x3 conv) x2 (shared weights) -> 2x2 maxpool
# ----------------------------------------------------------------------------
def _make_rcl_kernel(C, H, W, PAD):
    HW = H * W
    # flat-space shifts of the 9 conv taps, k = ky*3 + kx
    shifts = tuple((ky - 1) * W + (kx - 1) for ky in range(3) for kx in range(3))

    def kernel(x_ref, w1_ref, s1_ref, b1_ref, w36_ref, s3_ref, b3_ref,
               m_ref, g_ref, o_ref, zp_ref, z36_ref):
        # Scratch is uninitialized: zero ONLY the halo strips once per grid
        # step (the interior is always overwritten before any read, and every
        # halo read is either multiplied by a zero boundary mask or dropped by
        # the 0/1 pool-selection matmul, so the halos just need to be finite).
        # Both strips start at lane-aligned offsets -> unmasked stores.
        # "parallel" grid sharding stays correct: no state crosses iterations.
        zeros_pad = jnp.zeros((C, PAD), jnp.float32)
        zp_ref[:, pl.ds(0, PAD)] = zeros_pad
        zp_ref[:, pl.ds(PAD + HW, PAD)] = zeros_pad

        x = x_ref[0]                                              # (C, HW) f32

        # ---- ffconv: 1x1 conv + folded BN + ReLU -------------------------
        y = jnp.dot(w1_ref[...], x, preferred_element_type=jnp.float32)
        y = jnp.maximum(y * s1_ref[...] + b1_ref[...], 0.0)

        # ---- shared rrconv: 3x3 conv + folded BN + ReLU ------------------
        def conv3x3(z):                                           # z: (C, HW)
            zp_ref[:, pl.ds(PAD, HW)] = z                         # write interior
            for k, s in enumerate(shifts):                        # 9 static taps
                tap = zp_ref[:, pl.ds(PAD + s, HW)]               # shifted read
                if s != 0:                                        # centre mask == 1
                    tap = tap * m_ref[pl.ds(k, 1), :]
                z36_ref[pl.ds(k * C, C), :] = tap
            acc = jnp.dot(w36_ref[...], z36_ref[...],             # one K = 9*C dot
                          preferred_element_type=jnp.float32)     # (C, HW)
            return jnp.maximum(acc * s3_ref[...] + b3_ref[...], 0.0)

        y = conv3x3(x + y)        # recurrent step 1 (residual add fused)
        y = conv3x3(x + y)        # recurrent step 2

        # ---- fused 2x2 max-pool epilogue ---------------------------------
        zp_ref[:, pl.ds(PAD, HW)] = y
        t = jnp.maximum(
            jnp.maximum(zp_ref[:, pl.ds(PAD, HW)],
                        zp_ref[:, pl.ds(PAD + 1, HW)]),
            jnp.maximum(zp_ref[:, pl.ds(PAD + W, HW)],
                        zp_ref[:, pl.ds(PAD + W + 1, HW)]))
        # 0/1 selection matmul picks the top-left position of every 2x2 window
        # (positions whose shifted reads bled into the halo are never selected).
        pooled = jnp.dot(t, g_ref[...], preferred_element_type=jnp.float32)
        # TODO(synk): pooled last dim (HW/4 = 64) < 128 lanes -> masked store;
        # a fully lane-dense output would need a sublane->lane relayout
        # in-kernel; negligible for this 2 KiB output.
        o_ref[0] = pooled.astype(o_ref.dtype)

    return kernel


def _fold_bn(p):
    # inference BN folded with the conv bias: out = scale*conv_nobias + bias
    scale = p["gamma"] / jnp.sqrt(p["var"] + EPS)
    bias = p["beta"] + scale * (p["b"] - p["mean"])
    return scale.reshape(-1, 1), bias.reshape(-1, 1)


@jax.jit
def rcl_block_forward(x, params):
    N, C, H, W = x.shape
    HW = H * W
    Ho, Wo = H // 2, W // 2
    PAD = 128                                   # lane-aligned, >= W + 1
    assert W + 1 <= PAD and H % 2 == 0 and W % 2 == 0
    assert params["rr"]["w"].shape[0] == C      # planes == inplanes (x + y)

    sc1, bi1 = _fold_bn(params["ff"])
    sc3, bi3 = _fold_bn(params["rr"])
    w1 = params["ff"]["w"][:, :, 0, 0]                               # (C, C)
    # (C, 9*C): column k*C + ci holds w[co, ci, ky, kx], k = ky*3 + kx
    w36 = jnp.transpose(params["rr"]["w"], (0, 2, 3, 1)).reshape(C, 9 * C)

    # per-tap boundary masks (zero out horizontal/vertical out-of-range reads)
    hh = jnp.arange(HW, dtype=jnp.int32) // W
    ww = jnp.arange(HW, dtype=jnp.int32) % W
    masks = jnp.stack(
        [((hh + ky - 1 >= 0) & (hh + ky - 1 < H) &
          (ww + kx - 1 >= 0) & (ww + kx - 1 < W)).astype(jnp.float32)
         for ky in range(3) for kx in range(3)], axis=0)             # (9, HW)

    # 0/1 compaction matrix: column j selects flat index of window (ho, wo)
    j = jnp.arange(Ho * Wo, dtype=jnp.int32)
    p0 = (j // Wo) * (2 * W) + (j % Wo) * 2
    gsel = (jnp.arange(HW, dtype=jnp.int32)[:, None]
            == p0[None, :]).astype(jnp.float32)                     # (HW, Ho*Wo)

    kernel = _make_rcl_kernel(C, H, W, PAD)
    out_flat = pl.pallas_call(
        kernel,
        out_shape=jax.ShapeDtypeStruct((N, C, Ho * Wo), x.dtype),
        grid_spec=pltpu.PrefetchScalarGridSpec(
            num_scalar_prefetch=0,
            grid=(N,),
            in_specs=[
                pl.BlockSpec((1, C, HW), lambda n: (n, 0, 0)),       # x
                pl.BlockSpec((C, C), lambda n: (0, 0)),              # w1
                pl.BlockSpec((C, 1), lambda n: (0, 0)),              # scale ff
                pl.BlockSpec((C, 1), lambda n: (0, 0)),              # bias  ff
                pl.BlockSpec((C, 9 * C), lambda n: (0, 0)),          # w36
                pl.BlockSpec((C, 1), lambda n: (0, 0)),              # scale rr
                pl.BlockSpec((C, 1), lambda n: (0, 0)),              # bias  rr
                pl.BlockSpec((9, HW), lambda n: (0, 0)),             # tap masks
                pl.BlockSpec((HW, Ho * Wo), lambda n: (0, 0)),       # pool select
            ],
            out_specs=pl.BlockSpec((1, C, Ho * Wo), lambda n: (n, 0, 0)),
            scratch_shapes=[
                pltpu.VMEM((C, HW + 2 * PAD), jnp.float32),   # halo-padded conv input
                pltpu.VMEM((9 * C, HW), jnp.float32),         # stacked im2col taps
            ]),
        compiler_params=pltpu.CompilerParams(
            dimension_semantics=("parallel",)),
    )(x.reshape(N, C, HW), w1, sc1, bi1, w36, sc3, bi3, masks, gsel)
    return out_flat.reshape(N, C, Ho, Wo)


# ----------------------------------------------------------------------------
# Parameter setup
# ----------------------------------------------------------------------------
def init_params(key, inplanes, planes):
    ks = jax.random.split(key, 12)

    def branch(k0, k1, k2, k3, k4, k5, kh, kw):
        return dict(
            w=jax.random.normal(k0, (planes, inplanes, kh, kw), jnp.float32) * 0.2,
            b=jax.random.normal(k1, (planes,), jnp.float32) * 0.1,
            gamma=1.0 + 0.1 * jax.random.normal(k2, (planes,), jnp.float32),
            beta=0.1 * jax.random.normal(k3, (planes,), jnp.float32),
            mean=0.1 * jax.random.normal(k4, (planes,), jnp.float32),
            var=0.5 + jax.random.uniform(k5, (planes,), jnp.float32),
        )

    return dict(ff=branch(*ks[0:6], 1, 1), rr=branch(*ks[6:12], 3, 3))


# ----------------------------------------------------------------------------
# Pure-JAX reference (mirrors the PyTorch module in eval mode)
# ----------------------------------------------------------------------------
def reference_forward(x, params):
    def conv2d(x, w, b, pad):
        out = lax.conv_general_dilated(
            x, w, window_strides=(1, 1), padding=[(pad, pad), (pad, pad)],
            dimension_numbers=("NCHW", "OIHW", "NCHW"))
        return out + b[None, :, None, None]

    def bn_relu(x, p):
        y = (x - p["mean"][None, :, None, None]) / jnp.sqrt(
            p["var"][None, :, None, None] + EPS)
        y = p["gamma"][None, :, None, None] * y + p["beta"][None, :, None, None]
        return jnp.maximum(y, 0.0)

    ff, rr = params["ff"], params["rr"]
    y = bn_relu(conv2d(x, ff["w"], ff["b"], 0), ff)
    y = bn_relu(conv2d(x + y, rr["w"], rr["b"], 1), rr)
    y = bn_relu(conv2d(x + y, rr["w"], rr["b"], 1), rr)
    return lax.reduce_window(y, -jnp.inf, lax.max,
                             (1, 1, 2, 2), (1, 1, 2, 2), "VALID")


if __name__ == "__main__":
    # TODO(synk): nn.Dropout() is identity in eval mode; training-mode random
    # drop is not implemented.
    N, C, H, W = 2, 4, 16, 16            # inplanes == planes (x + y requires it)
    key = jax.random.PRNGKey(0)
    kx, kp = jax.random.split(key)
    x = jax.random.normal(kx, (N, C, H, W), jnp.float32)
    params = init_params(kp, C, C)

    out = jax.block_until_ready(rcl_block_forward(x, params))
    ref = jax.block_until_ready(reference_forward(x, params))

    assert out.shape == (N, C, H // 2, W // 2), out.shape
    assert jnp.allclose(out, ref, rtol=1e-4, atol=1e-4), \
        float(jnp.max(jnp.abs(out - ref)))
    print("KERNEL_OK")
</pallas_src>

<mosaic_0001>
module attributes {stable_mosaic.version = 11 : i64} {
  func.func @kernel(%arg0: i32, %arg1: memref<1x4x256xf32, #tpu.memory_space<vmem>>, %arg2: memref<4x4xf32, #tpu.memory_space<vmem>>, %arg3: memref<4x1xf32, #tpu.memory_space<vmem>>, %arg4: memref<4x1xf32, #tpu.memory_space<vmem>>, %arg5: memref<4x36xf32, #tpu.memory_space<vmem>>, %arg6: memref<4x1xf32, #tpu.memory_space<vmem>>, %arg7: memref<4x1xf32, #tpu.memory_space<vmem>>, %arg8: memref<9x256xf32, #tpu.memory_space<vmem>>, %arg9: memref<256x64xf32, #tpu.memory_space<vmem>>, %arg10: memref<1x4x64xf32, #tpu.memory_space<vmem>>, %arg11: memref<4x512xf32, #tpu.memory_space<vmem>>, %arg12: memref<36x256xf32, #tpu.memory_space<vmem>>) attributes {dimension_semantics = [#tpu.dimension_semantics<parallel>], iteration_bounds = array<i64: 2>, scalar_prefetch = 0 : i64, scratch_operands = 2 : i64, tpu.core_type = #tpu.core_type<tc>, window_params = [{transform_indices = @transform_0, window_bounds = array<i64: 1, 4, 256>}, {pipeline_mode = #tpu.pipeline_mode<synchronous>, transform_indices = @transform_1, window_bounds = array<i64: 4, 4>}, {pipeline_mode = #tpu.pipeline_mode<synchronous>, transform_indices = @transform_2, window_bounds = array<i64: 4, 1>}, {pipeline_mode = #tpu.pipeline_mode<synchronous>, transform_indices = @transform_3, window_bounds = array<i64: 4, 1>}, {pipeline_mode = #tpu.pipeline_mode<synchronous>, transform_indices = @transform_4, window_bounds = array<i64: 4, 36>}, {pipeline_mode = #tpu.pipeline_mode<synchronous>, transform_indices = @transform_5, window_bounds = array<i64: 4, 1>}, {pipeline_mode = #tpu.pipeline_mode<synchronous>, transform_indices = @transform_6, window_bounds = array<i64: 4, 1>}, {pipeline_mode = #tpu.pipeline_mode<synchronous>, transform_indices = @transform_7, window_bounds = array<i64: 9, 256>}, {pipeline_mode = #tpu.pipeline_mode<synchronous>, transform_indices = @transform_8, window_bounds = array<i64: 256, 64>}, {transform_indices = @transform_9, window_bounds = array<i64: 1, 4, 64>}]} {
    %cst = arith.constant 0.000000e+00 : f32
    %0 = vector.broadcast %cst : f32 to vector<4x128xf32>
    %c0 = arith.constant 0 : index
    %c0_0 = arith.constant 0 : index
    %1 = vector.load %arg11[%c0, %c0_0] : memref<4x512xf32, #tpu.memory_space<vmem>>, vector<4x128xf32>
    tpu.vector_store %arg11[%c0, %c0_0], %0 {strides = array<i32>} : memref<4x512xf32, #tpu.memory_space<vmem>>, vector<4x128xf32>,
    %c0_1 = arith.constant 0 : index
    %c384 = arith.constant 384 : index
    %2 = vector.load %arg11[%c0_1, %c384] : memref<4x512xf32, #tpu.memory_space<vmem>>, vector<4x128xf32>
    tpu.vector_store %arg11[%c0_1, %c384], %0 {strides = array<i32>} : memref<4x512xf32, #tpu.memory_space<vmem>>, vector<4x128xf32>,
    %c0_2 = arith.constant 0 : index
    %c0_3 = arith.constant 0 : index
    %c0_4 = arith.constant 0 : index
    %3 = vector.load %arg1[%c0_2, %c0_3, %c0_4] : memref<1x4x256xf32, #tpu.memory_space<vmem>>, vector<1x4x256xf32>
    %4 = vector.shape_cast %3 : vector<1x4x256xf32> to vector<4x256xf32>
    %c0_5 = arith.constant 0 : index
    %c0_6 = arith.constant 0 : index
    %5 = vector.load %arg2[%c0_5, %c0_6] : memref<4x4xf32, #tpu.memory_space<vmem>>, vector<4x4xf32>
    %cst_7 = arith.constant dense<0.000000e+00> : vector<4x256xf32>
    %6 = tpu.matmul %5, %4, %cst_7 {dimension_numbers = #tpu.dot_dimension_numbers<[1], [0], [0], [1], [0, 0, 1, 1], [], []>} : vector<4x4xf32>, vector<4x256xf32>, vector<4x256xf32> -> vector<4x256xf32>
    %c0_8 = arith.constant 0 : index
    %c0_9 = arith.constant 0 : index
    %7 = vector.load %arg3[%c0_8, %c0_9] : memref<4x1xf32, #tpu.memory_space<vmem>>, vector<4x1xf32>
    %8 = vector.broadcast %7 : vector<4x1xf32> to vector<4x256xf32>
    %9 = arith.mulf %6, %8 : vector<4x256xf32>
    %c0_10 = arith.constant 0 : index
    %c0_11 = arith.constant 0 : index
    %10 = vector.load %arg4[%c0_10, %c0_11] : memref<4x1xf32, #tpu.memory_space<vmem>>, vector<4x1xf32>
    %11 = vector.broadcast %10 : vector<4x1xf32> to vector<4x256xf32>
    %12 = arith.addf %9, %11 : vector<4x256xf32>
    %cst_12 = arith.constant 0.000000e+00 : f32
    %13 = vector.broadcast %cst_12 : f32 to vector<4x256xf32>
    %14 = arith.maximumf %12, %13 : vector<4x256xf32>
    %15 = arith.addf %4, %14 : vector<4x256xf32>
    %c0_13 = arith.constant 0 : index
    %c128 = arith.constant 128 : index
    %16 = vector.load %arg11[%c0_13, %c128] : memref<4x512xf32, #tpu.memory_space<vmem>>, vector<4x256xf32>
    tpu.vector_store %arg11[%c0_13, %c128], %15 {strides = array<i32>} : memref<4x512xf32, #tpu.memory_space<vmem>>, vector<4x256xf32>,
    %c0_14 = arith.constant 0 : index
    %c111 = arith.constant 111 : index
    %17 = vector.load %arg11[%c0_14, %c111] : memref<4x512xf32, #tpu.memory_space<vmem>>, vector<4x256xf32>
    %c0_15 = arith.constant 0 : index
    %c0_16 = arith.constant 0 : index
    %18 = vector.load %arg8[%c0_15, %c0_16] : memref<9x256xf32, #tpu.memory_space<vmem>>, vector<1x256xf32>
    %19 = vector.broadcast %18 : vector<1x256xf32> to vector<4x256xf32>
    %20 = arith.mulf %17, %19 : vector<4x256xf32>
    %c0_17 = arith.constant 0 : index
    %c0_18 = arith.constant 0 : index
    %21 = vector.load %arg12[%c0_17, %c0_18] : memref<36x256xf32, #tpu.memory_space<vmem>>, vector<4x256xf32>
    tpu.vector_store %arg12[%c0_17, %c0_18], %20 {strides = array<i32>} : memref<36x256xf32, #tpu.memory_space<vmem>>, vector<4x256xf32>,
    %c0_19 = arith.constant 0 : index
    %c112 = arith.constant 112 : index
    %22 = vector.load %arg11[%c0_19, %c112] : memref<4x512xf32, #tpu.memory_space<vmem>>, vector<4x256xf32>
    %c1 = arith.constant 1 : index
    %c0_20 = arith.constant 0 : index
    %23 = vector.load %arg8[%c1, %c0_20] : memref<9x256xf32, #tpu.memory_space<vmem>>, vector<1x256xf32>
    %24 = vector.broadcast %23 : vector<1x256xf32> to vector<4x256xf32>
    %25 = arith.mulf %22, %24 : vector<4x256xf32>
    %c4 = arith.constant 4 : index
    %c0_21 = arith.constant 0 : index
    %26 = vector.load %arg12[%c4, %c0_21] : memref<36x256xf32, #tpu.memory_space<vmem>>, vector<4x256xf32>
    tpu.vector_store %arg12[%c4, %c0_21], %25 {strides = array<i32>} : memref<36x256xf32, #tpu.memory_space<vmem>>, vector<4x256xf32>,
    %c0_22 = arith.constant 0 : index
    %c113 = arith.constant 113 : index
    %27 = vector.load %arg11[%c0_22, %c113] : memref<4x512xf32, #tpu.memory_space<vmem>>, vector<4x256xf32>
    %c2 = arith.constant 2 : index
    %c0_23 = arith.constant 0 : index
    %28 = vector.load %arg8[%c2, %c0_23] : memref<9x256xf32, #tpu.memory_space<vmem>>, vector<1x256xf32>
    %29 = vector.broadcast %28 : vector<1x256xf32> to vector<4x256xf32>
    %30 = arith.mulf %27, %29 : vector<4x256xf32>
    %c8 = arith.constant 8 : index
    %c0_24 = arith.constant 0 : index
    %31 = vector.load %arg12[%c8, %c0_24] : memref<36x256xf32, #tpu.memory_space<vmem>>, vector<4x256xf32>
    tpu.vector_store %arg12[%c8, %c0_24], %30 {strides = array<i32>} : memref<36x256xf32, #tpu.memory_space<vmem>>, vector<4x256xf32>,
    %c0_25 = arith.constant 0 : index
    %c127 = arith.constant 127 : index
    %32 = vector.load %arg11[%c0_25, %c127] : memref<4x512xf32, #tpu.memory_space<vmem>>, vector<4x256xf32>
    %c3 = arith.constant 3 : index
    %c0_26 = arith.constant 0 : index
    %33 = vector.load %arg8[%c3, %c0_26] : memref<9x256xf32, #tpu.memory_space<vmem>>, vector<1x256xf32>
    %34 = vector.broadcast %33 : vector<1x256xf32> to vector<4x256xf32>
    %35 = arith.mulf %32, %34 : vector<4x256xf32>
    %c12 = arith.constant 12 : index
    %c0_27 = arith.constant 0 : index
    %36 = vector.load %arg12[%c12, %c0_27] : memref<36x256xf32, #tpu.memory_space<vmem>>, vector<4x256xf32>
    tpu.vector_store %arg12[%c12, %c0_27], %35 {strides = array<i32>} : memref<36x256xf32, #tpu.memory_space<vmem>>, vector<4x256xf32>,
    %c0_28 = arith.constant 0 : index
    %c128_29 = arith.constant 128 : index
    %37 = vector.load %arg11[%c0_28, %c128_29] : memref<4x512xf32, #tpu.memory_space<vmem>>, vector<4x256xf32>
    %c16 = arith.constant 16 : index
    %c0_30 = arith.constant 0 : index
    %38 = vector.load %arg12[%c16, %c0_30] : memref<36x256xf32, #tpu.memory_space<vmem>>, vector<4x256xf32>
    tpu.vector_store %arg12[%c16, %c0_30], %37 {strides = array<i32>} : memref<36x256xf32, #tpu.memory_space<vmem>>, vector<4x256xf32>,
    %c0_31 = arith.constant 0 : index
    %c129 = arith.constant 129 : index
    %39 = vector.load %arg11[%c0_31, %c129] : memref<4x512xf32, #tpu.memory_space<vmem>>, vector<4x256xf32>
    %c5 = arith.constant 5 : index
    %c0_32 = arith.constant 0 : index
    %40 = vector.load %arg8[%c5, %c0_32] : memref<9x256xf32, #tpu.memory_space<vmem>>, vector<1x256xf32>
    %41 = vector.broadcast %40 : vector<1x256xf32> to vector<4x256xf32>
    %42 = arith.mulf %39, %41 : vector<4x256xf32>
    %c20 = arith.constant 20 : index
    %c0_33 = arith.constant 0 : index
    %43 = vector.load %arg12[%c20, %c0_33] : memref<36x256xf32, #tpu.memory_space<vmem>>, vector<4x256xf32>
    tpu.vector_store %arg12[%c20, %c0_33], %42 {strides = array<i32>} : memref<36x256xf32, #tpu.memory_space<vmem>>, vector<4x256xf32>,
    %c0_34 = arith.constant 0 : index
    %c143 = arith.constant 143 : index
    %44 = vector.load %arg11[%c0_34, %c143] : memref<4x512xf32, #tpu.memory_space<vmem>>, vector<4x256xf32>
    %c6 = arith.constant 6 : index
    %c0_35 = arith.constant 0 : index
    %45 = vector.load %arg8[%c6, %c0_35] : memref<9x256xf32, #tpu.memory_space<vmem>>, vector<1x256xf32>
    %46 = vector.broadcast %45 : vector<1x256xf32> to vector<4x256xf32>
    %47 = arith.mulf %44, %46 : vector<4x256xf32>
    %c24 = arith.constant 24 : index
    %c0_36 = arith.constant 0 : index
    %48 = vector.load %arg12[%c24, %c0_36] : memref<36x256xf32, #tpu.memory_space<vmem>>, vector<4x256xf32>
    tpu.vector_store %arg12[%c24, %c0_36], %47 {strides = array<i32>} : memref<36x256xf32, #tpu.memory_space<vmem>>, vector<4x256xf32>,
    %c0_37 = arith.constant 0 : index
    %c144 = arith.constant 144 : index
    %49 = vector.load %arg11[%c0_37, %c144] : memref<4x512xf32, #tpu.memory_space<vmem>>, vector<4x256xf32>
    %c7 = arith.constant 7 : index
    %c0_38 = arith.constant 0 : index
    %50 = vector.load %arg8[%c7, %c0_38] : memref<9x256xf32, #tpu.memory_space<vmem>>, vector<1x256xf32>
    %51 = vector.broadcast %50 : vector<1x256xf32> to vector<4x256xf32>
    %52 = arith.mulf %49, %51 : vector<4x256xf32>
    %c28 = arith.constant 28 : index
    %c0_39 = arith.constant 0 : index
    %53 = vector.load %arg12[%c28, %c0_39] : memref<36x256xf32, #tpu.memory_space<vmem>>, vector<4x256xf32>
    tpu.vector_store %arg12[%c28, %c0_39], %52 {strides = array<i32>} : memref<36x256xf32, #tpu.memory_space<vmem>>, vector<4x256xf32>,
    %c0_40 = arith.constant 0 : index
    %c145 = arith.constant 145 : index
    %54 = vector.load %arg11[%c0_40, %c145] : memref<4x512xf32, #tpu.memory_space<vmem>>, vector<4x256xf32>
    %c8_41 = arith.constant 8 : index
    %c0_42 = arith.constant 0 : index
    %55 = vector.load %arg8[%c8_41, %c0_42] : memref<9x256xf32, #tpu.memory_space<vmem>>, vector<1x256xf32>
    %56 = vector.broadcast %55 : vector<1x256xf32> to vector<4x256xf32>
    %57 = arith.mulf %54, %56 : vector<4x256xf32>
    %c32 = arith.constant 32 : index
    %c0_43 = arith.constant 0 : index
    %58 = vector.load %arg12[%c32, %c0_43] : memref<36x256xf32, #tpu.memory_space<vmem>>, vector<4x256xf32>
    tpu.vector_store %arg12[%c32, %c0_43], %57 {strides = array<i32>} : memref<36x256xf32, #tpu.memory_space<vmem>>, vector<4x256xf32>,
    %c0_44 = arith.constant 0 : index
    %c0_45 = arith.constant 0 : index
    %59 = vector.load %arg5[%c0_44, %c0_45] : memref<4x36xf32, #tpu.memory_space<vmem>>, vector<4x36xf32>
    %c0_46 = arith.constant 0 : index
    %c0_47 = arith.constant 0 : index
    %60 = vector.load %arg12[%c0_46, %c0_47] : memref<36x256xf32, #tpu.memory_space<vmem>>, vector<36x256xf32>
    %cst_48 = arith.constant dense<0.000000e+00> : vector<4x256xf32>
    %61 = tpu.matmul %59, %60, %cst_48 {dimension_numbers = #tpu.dot_dimension_numbers<[1], [0], [0], [1], [0, 0, 1, 1], [], []>} : vector<4x36xf32>, vector<36x256xf32>, vector<4x256xf32> -> vector<4x256xf32>
    %c0_49 = arith.constant 0 : index
    %c0_50 = arith.constant 0 : index
    %62 = vector.load %arg6[%c0_49, %c0_50] : memref<4x1xf32, #tpu.memory_space<vmem>>, vector<4x1xf32>
    %63 = vector.broadcast %62 : vector<4x1xf32> to vector<4x256xf32>
    %64 = arith.mulf %61, %63 : vector<4x256xf32>
    %c0_51 = arith.constant 0 : index
    %c0_52 = arith.constant 0 : index
    %65 = vector.load %arg7[%c0_51, %c0_52] : memref<4x1xf32, #tpu.memory_space<vmem>>, vector<4x1xf32>
    %66 = vector.broadcast %65 : vector<4x1xf32> to vector<4x256xf32>
    %67 = arith.addf %64, %66 : vector<4x256xf32>
    %cst_53 = arith.constant 0.000000e+00 : f32
    %68 = vector.broadcast %cst_53 : f32 to vector<4x256xf32>
    %69 = arith.maximumf %67, %68 : vector<4x256xf32>
    %70 = arith.addf %4, %69 : vector<4x256xf32>
    %c0_54 = arith.constant 0 : index
    %c128_55 = arith.constant 128 : index
    %71 = vector.load %arg11[%c0_54, %c128_55] : memref<4x512xf32, #tpu.memory_space<vmem>>, vector<4x256xf32>
    tpu.vector_store %arg11[%c0_54, %c128_55], %70 {strides = array<i32>} : memref<4x512xf32, #tpu.memory_space<vmem>>, vector<4x256xf32>,
    %c0_56 = arith.constant 0 : index
    %c111_57 = arith.constant 111 : index
    %72 = vector.load %arg11[%c0_56, %c111_57] : memref<4x512xf32, #tpu.memory_space<vmem>>, vector<4x256xf32>
    %c0_58 = arith.constant 0 : index
    %c0_59 = arith.constant 0 : index
    %73 = vector.load %arg8[%c0_58, %c0_59] : memref<9x256xf32, #tpu.memory_space<vmem>>, vector<1x256xf32>
    %74 = vector.broadcast %73 : vector<1x256xf32> to vector<4x256xf32>
    %75 = arith.mulf %72, %74 : vector<4x256xf32>
    %c0_60 = arith.constant 0 : index
    %c0_61 = arith.constant 0 : index
    %76 = vector.load %arg12[%c0_60, %c0_61] : memref<36x256xf32, #tpu.memory_space<vmem>>, vector<4x256xf32>
    tpu.vector_store %arg12[%c0_60, %c0_61], %75 {strides = array<i32>} : memref<36x256xf32, #tpu.memory_space<vmem>>, vector<4x256xf32>,
    %c0_62 = arith.constant 0 : index
    %c112_63 = arith.constant 112 : index
    %77 = vector.load %arg11[%c0_62, %c112_63] : memref<4x512xf32, #tpu.memory_space<vmem>>, vector<4x256xf32>
    %c1_64 = arith.constant 1 : index
    %c0_65 = arith.constant 0 : index
    %78 = vector.load %arg8[%c1_64, %c0_65] : memref<9x256xf32, #tpu.memory_space<vmem>>, vector<1x256xf32>
    %79 = vector.broadcast %78 : vector<1x256xf32> to vector<4x256xf32>
    %80 = arith.mulf %77, %79 : vector<4x256xf32>
    %c4_66 = arith.constant 4 : index
    %c0_67 = arith.constant 0 : index
    %81 = vector.load %arg12[%c4_66, %c0_67] : memref<36x256xf32, #tpu.memory_space<vmem>>, vector<4x256xf32>
    tpu.vector_store %arg12[%c4_66, %c0_67], %80 {strides = array<i32>} : memref<36x256xf32, #tpu.memory_space<vmem>>, vector<4x256xf32>,
    %c0_68 = arith.constant 0 : index
    %c113_69 = arith.constant 113 : index
    %82 = vector.load %arg11[%c0_68, %c113_69] : memref<4x512xf32, #tpu.memory_space<vmem>>, vector<4x256xf32>
    %c2_70 = arith.constant 2 : index
    %c0_71 = arith.constant 0 : index
    %83 = vector.load %arg8[%c2_70, %c0_71] : memref<9x256xf32, #tpu.memory_space<vmem>>, vector<1x256xf32>
    %84 = vector.broadcast %83 : vector<1x256xf32> to vector<4x256xf32>
    %85 = arith.mulf %82, %84 : vector<4x256xf32>
    %c8_72 = arith.constant 8 : index
    %c0_73 = arith.constant 0 : index
    %86 = vector.load %arg12[%c8_72, %c0_73] : memref<36x256xf32, #tpu.memory_space<vmem>>, vector<4x256xf32>
    tpu.vector_store %arg12[%c8_72, %c0_73], %85 {strides = array<i32>} : memref<36x256xf32, #tpu.memory_space<vmem>>, vector<4x256xf32>,
    %c0_74 = arith.constant 0 : index
    %c127_75 = arith.constant 127 : index
    %87 = vector.load %arg11[%c0_74, %c127_75] : memref<4x512xf32, #tpu.memory_space<vmem>>, vector<4x256xf32>
    %c3_76 = arith.constant 3 : index
    %c0_77 = arith.constant 0 : index
    %88 = vector.load %arg8[%c3_76, %c0_77] : memref<9x256xf32, #tpu.memory_space<vmem>>, vector<1x256xf32>
    %89 = vector.broadcast %88 : vector<1x256xf32> to vector<4x256xf32>
    %90 = arith.mulf %87, %89 : vector<4x256xf32>
    %c12_78 = arith.constant 12 : index
    %c0_79 = arith.constant 0 : index
    %91 = vector.load %arg12[%c12_78, %c0_79] : memref<36x256xf32, #tpu.memory_space<vmem>>, vector<4x256xf32>
    tpu.vector_store %arg12[%c12_78, %c0_79], %90 {strides = array<i32>} : memref<36x256xf32, #tpu.memory_space<vmem>>, vector<4x256xf32>,
    %c0_80 = arith.constant 0 : index
    %c128_81 = arith.constant 128 : index
    %92 = vector.load %arg11[%c0_80, %c128_81] : memref<4x512xf32, #tpu.memory_space<vmem>>, vector<4x256xf32>
    %c16_82 = arith.constant 16 : index
    %c0_83 = arith.constant 0 : index
    %93 = vector.load %arg12[%c16_82, %c0_83] : memref<36x256xf32, #tpu.memory_space<vmem>>, vector<4x256xf32>
    tpu.vector_store %arg12[%c16_82, %c0_83], %92 {strides = array<i32>} : memref<36x256xf32, #tpu.memory_space<vmem>>, vector<4x256xf32>,
    %c0_84 = arith.constant 0 : index
    %c129_85 = arith.constant 129 : index
    %94 = vector.load %arg11[%c0_84, %c129_85] : memref<4x512xf32, #tpu.memory_space<vmem>>, vector<4x256xf32>
    %c5_86 = arith.constant 5 : index
    %c0_87 = arith.constant 0 : index
    %95 = vector.load %arg8[%c5_86, %c0_87] : memref<9x256xf32, #tpu.memory_space<vmem>>, vector<1x256xf32>
    %96 = vector.broadcast %95 : vector<1x256xf32> to vector<4x256xf32>
    %97 = arith.mulf %94, %96 : vector<4x256xf32>
    %c20_88 = arith.constant 20 : index
    %c0_89 = arith.constant 0 : index
    %98 = vector.load %arg12[%c20_88, %c0_89] : memref<36x256xf32, #tpu.memory_space<vmem>>, vector<4x256xf32>
    tpu.vector_store %arg12[%c20_88, %c0_89], %97 {strides = array<i32>} : memref<36x256xf32, #tpu.memory_space<vmem>>, vector<4x256xf32>,
    %c0_90 = arith.constant 0 : index
    %c143_91 = arith.constant 143 : index
    %99 = vector.load %arg11[%c0_90, %c143_91] : memref<4x512xf32, #tpu.memory_space<vmem>>, vector<4x256xf32>
    %c6_92 = arith.constant 6 : index
    %c0_93 = arith.constant 0 : index
    %100 = vector.load %arg8[%c6_92, %c0_93] : memref<9x256xf32, #tpu.memory_space<vmem>>, vector<1x256xf32>
    %101 = vector.broadcast %100 : vector<1x256xf32> to vector<4x256xf32>
    %102 = arith.mulf %99, %101 : vector<4x256xf32>
    %c24_94 = arith.constant 24 : index
    %c0_95 = arith.constant 0 : index
    %103 = vector.load %arg12[%c24_94, %c0_95] : memref<36x256xf32, #tpu.memory_space<vmem>>, vector<4x256xf32>
    tpu.vector_store %arg12[%c24_94, %c0_95], %102 {strides = array<i32>} : memref<36x256xf32, #tpu.memory_space<vmem>>, vector<4x256xf32>,
    %c0_96 = arith.constant 0 : index
    %c144_97 = arith.constant 144 : index
    %104 = vector.load %arg11[%c0_96, %c144_97] : memref<4x512xf32, #tpu.memory_space<vmem>>, vector<4x256xf32>
    %c7_98 = arith.constant 7 : index
    %c0_99 = arith.constant 0 : index
    %105 = vector.load %arg8[%c7_98, %c0_99] : memref<9x256xf32, #tpu.memory_space<vmem>>, vector<1x256xf32>
    %106 = vector.broadcast %105 : vector<1x256xf32> to vector<4x256xf32>
    %107 = arith.mulf %104, %106 : vector<4x256xf32>
    %c28_100 = arith.constant 28 : index
    %c0_101 = arith.constant 0 : index
    %108 = vector.load %arg12[%c28_100, %c0_101] : memref<36x256xf32, #tpu.memory_space<vmem>>, vector<4x256xf32>
    tpu.vector_store %arg12[%c28_100, %c0_101], %107 {strides = array<i32>} : memref<36x256xf32, #tpu.memory_space<vmem>>, vector<4x256xf32>,
    %c0_102 = arith.constant 0 : index
    %c145_103 = arith.constant 145 : index
    %109 = vector.load %arg11[%c0_102, %c145_103] : memref<4x512xf32, #tpu.memory_space<vmem>>, vector<4x256xf32>
    %c8_104 = arith.constant 8 : index
    %c0_105 = arith.constant 0 : index
    %110 = vector.load %arg8[%c8_104, %c0_105] : memref<9x256xf32, #tpu.memory_space<vmem>>, vector<1x256xf32>
    %111 = vector.broadcast %110 : vector<1x256xf32> to vector<4x256xf32>
    %112 = arith.mulf %109, %111 : vector<4x256xf32>
    %c32_106 = arith.constant 32 : index
    %c0_107 = arith.constant 0 : index
    %113 = vector.load %arg12[%c32_106, %c0_107] : memref<36x256xf32, #tpu.memory_space<vmem>>, vector<4x256xf32>
    tpu.vector_store %arg12[%c32_106, %c0_107], %112 {strides = array<i32>} : memref<36x256xf32, #tpu.memory_space<vmem>>, vector<4x256xf32>,
    %c0_108 = arith.constant 0 : index
    %c0_109 = arith.constant 0 : index
    %114 = vector.load %arg5[%c0_108, %c0_109] : memref<4x36xf32, #tpu.memory_space<vmem>>, vector<4x36xf32>
    %c0_110 = arith.constant 0 : index
    %c0_111 = arith.constant 0 : index
    %115 = vector.load %arg12[%c0_110, %c0_111] : memref<36x256xf32, #tpu.memory_space<vmem>>, vector<36x256xf32>
    %cst_112 = arith.constant dense<0.000000e+00> : vector<4x256xf32>
    %116 = tpu.matmul %114, %115, %cst_112 {dimension_numbers = #tpu.dot_dimension_numbers<[1], [0], [0], [1], [0, 0, 1, 1], [], []>} : vector<4x36xf32>, vector<36x256xf32>, vector<4x256xf32> -> vector<4x256xf32>
    %c0_113 = arith.constant 0 : index
    %c0_114 = arith.constant 0 : index
    %117 = vector.load %arg6[%c0_113, %c0_114] : memref<4x1xf32, #tpu.memory_space<vmem>>, vector<4x1xf32>
    %118 = vector.broadcast %117 : vector<4x1xf32> to vector<4x256xf32>
    %119 = arith.mulf %116, %118 : vector<4x256xf32>
    %c0_115 = arith.constant 0 : index
    %c0_116 = arith.constant 0 : index
    %120 = vector.load %arg7[%c0_115, %c0_116] : memref<4x1xf32, #tpu.memory_space<vmem>>, vector<4x1xf32>
    %121 = vector.broadcast %120 : vector<4x1xf32> to vector<4x256xf32>
    %122 = arith.addf %119, %121 : vector<4x256xf32>
    %cst_117 = arith.constant 0.000000e+00 : f32
    %123 = vector.broadcast %cst_117 : f32 to vector<4x256xf32>
    %124 = arith.maximumf %122, %123 : vector<4x256xf32>
    %c0_118 = arith.constant 0 : index
    %c128_119 = arith.constant 128 : index
    %125 = vector.load %arg11[%c0_118, %c128_119] : memref<4x512xf32, #tpu.memory_space<vmem>>, vector<4x256xf32>
    tpu.vector_store %arg11[%c0_118, %c128_119], %124 {strides = array<i32>} : memref<4x512xf32, #tpu.memory_space<vmem>>, vector<4x256xf32>,
    %c0_120 = arith.constant 0 : index
    %c128_121 = arith.constant 128 : index
    %126 = vector.load %arg11[%c0_120, %c128_121] : memref<4x512xf32, #tpu.memory_space<vmem>>, vector<4x256xf32>
    %c0_122 = arith.constant 0 : index
    %c129_123 = arith.constant 129 : index
    %127 = vector.load %arg11[%c0_122, %c129_123] : memref<4x512xf32, #tpu.memory_space<vmem>>, vector<4x256xf32>
    %128 = arith.maximumf %126, %127 : vector<4x256xf32>
    %c0_124 = arith.constant 0 : index
    %c144_125 = arith.constant 144 : index
    %129 = vector.load %arg11[%c0_124, %c144_125] : memref<4x512xf32, #tpu.memory_space<vmem>>, vector<4x256xf32>
    %c0_126 = arith.constant 0 : index
    %c145_127 = arith.constant 145 : index
    %130 = vector.load %arg11[%c0_126, %c145_127] : memref<4x512xf32, #tpu.memory_space<vmem>>, vector<4x256xf32>
    %131 = arith.maximumf %129, %130 : vector<4x256xf32>
    %132 = arith.maximumf %128, %131 : vector<4x256xf32>
    %c0_128 = arith.constant 0 : index
    %c0_129 = arith.constant 0 : index
    %133 = vector.load %arg9[%c0_128, %c0_129] : memref<256x64xf32, #tpu.memory_space<vmem>>, vector<256x64xf32>
    %cst_130 = arith.constant dense<0.000000e+00> : vector<4x64xf32>
    %134 = tpu.matmul %132, %133, %cst_130 {dimension_numbers = #tpu.dot_dimension_numbers<[1], [0], [0], [1], [0, 0, 1, 1], [], []>} : vector<4x256xf32>, vector<256x64xf32>, vector<4x64xf32> -> vector<4x64xf32>
    %c0_131 = arith.constant 0 : index
    %c0_132 = arith.constant 0 : index
    %c0_133 = arith.constant 0 : index
    %135 = vector.load %arg10[%c0_131, %c0_132, %c0_133] : memref<1x4x64xf32, #tpu.memory_space<vmem>>, vector<1x4x64xf32>
    %136 = vector.shape_cast %135 : vector<1x4x64xf32> to vector<4x64xf32>
    %137 = vector.shape_cast %134 : vector<4x64xf32> to vector<1x4x64xf32>
    tpu.vector_store %arg10[%c0_131, %c0_132, %c0_133], %137 {strides = array<i32>} : memref<1x4x64xf32, #tpu.memory_space<vmem>>, vector<1x4x64xf32>,
    return
  }
  func.func @transform_0(%arg0: i32) -> (i32, i32, i32) {
    %c0_i32 = arith.constant 0 : i32
    %c0_i32_0 = arith.constant 0 : i32
    %c0_i32_1 = arith.constant 0 : i32
    return %arg0, %c0_i32, %c0_i32_0 : i32, i32, i32
  }
  func.func @transform_1(%arg0: i32) -> (i32, i32) {
    %c0_i32 = arith.constant 0 : i32
    %c0_i32_0 = arith.constant 0 : i32
    %c0_i32_1 = arith.constant 0 : i32
    return %c0_i32, %c0_i32_0 : i32, i32
  }
  func.func @transform_2(%arg0: i32) -> (i32, i32) {
    %c0_i32 = arith.constant 0 : i32
    %c0_i32_0 = arith.constant 0 : i32
    %c0_i32_1 = arith.constant 0 : i32
    return %c0_i32, %c0_i32_0 : i32, i32
  }
  func.func @transform_3(%arg0: i32) -> (i32, i32) {
    %c0_i32 = arith.constant 0 : i32
    %c0_i32_0 = arith.constant 0 : i32
    %c0_i32_1 = arith.constant 0 : i32
    return %c0_i32, %c0_i32_0 : i32, i32
  }
  func.func @transform_4(%arg0: i32) -> (i32, i32) {
    %c0_i32 = arith.constant 0 : i32
    %c0_i32_0 = arith.constant 0 : i32
    %c0_i32_1 = arith.constant 0 : i32
    return %c0_i32, %c0_i32_0 : i32, i32
  }
  func.func @transform_5(%arg0: i32) -> (i32, i32) {
    %c0_i32 = arith.constant 0 : i32
    %c0_i32_0 = arith.constant 0 : i32
    %c0_i32_1 = arith.constant 0 : i32
    return %c0_i32, %c0_i32_0 : i32, i32
  }
  func.func @transform_6(%arg0: i32) -> (i32, i32) {
    %c0_i32 = arith.constant 0 : i32
    %c0_i32_0 = arith.constant 0 : i32
    %c0_i32_1 = arith.constant 0 : i32
    return %c0_i32, %c0_i32_0 : i32, i32
  }
  func.func @transform_7(%arg0: i32) -> (i32, i32) {
    %c0_i32 = arith.constant 0 : i32
    %c0_i32_0 = arith.constant 0 : i32
    %c0_i32_1 = arith.constant 0 : i32
    return %c0_i32, %c0_i32_0 : i32, i32
  }
  func.func @transform_8(%arg0: i32) -> (i32, i32) {
    %c0_i32 = arith.constant 0 : i32
    %c0_i32_0 = arith.constant 0 : i32
    %c0_i32_1 = arith.constant 0 : i32
    return %c0_i32, %c0_i32_0 : i32, i32
  }
  func.func @transform_9(%arg0: i32) -> (i32, i32, i32) {
    %c0_i32 = arith.constant 0 : i32
    %c0_i32_0 = arith.constant 0 : i32
    %c0_i32_1 = arith.constant 0 : i32
    return %arg0, %c0_i32, %c0_i32_0 : i32, i32, i32
  }
}

</mosaic_0001>

<bundles_post_ra>
// kernel: rcl_block_forward.1
= control target key start
LH: loop header
LB: loop body
LE: loop exit
PB: predicated region body
PF: predicated region fallthrough
CT: control target
= control target key end

     0   :  { %s1630_s30 = smov 0   ;;  %s2002_s0 = inlined_call_operand.vmem [shape: f32[2,4,256], index: 0, kind: input, shape index: {}]   ;;  %s2003_s1 = inlined_call_operand.vmem [shape: f32[4,4], index: 1, kind: input, shape index: {}]   ;;  %s2004_s2 = inlined_call_operand.vmem [shape: f32[4,1], index: 2, kind: input, shape index: {}]   ;;  %s2005_s3 = inlined_call_operand.vmem [shape: f32[4,1], index: 3, kind: input, shape index: {}]   ;;  %s2006_s4 = inlined_call_operand.vmem [shape: f32[4,36], index: 4, kind: input, shape index: {}]   ;;  %s2007_s5 = inlined_call_operand.vmem [shape: f32[4,1], index: 5, kind: input, shape index: {}]   ;;  %s2008_s6 = inlined_call_operand.vmem [shape: f32[4,1], index: 6, kind: input, shape index: {}]   ;;  %s2009_s7 = inlined_call_operand.vmem [shape: f32[9,256], index: 7, kind: input, shape index: {}]   ;;  %s2010_s8 = inlined_call_operand.vmem [shape: f32[256,64], index: 8, kind: input, shape index: {}]   ;;  %s2011_s9 = inlined_call_operand.vmem [shape: f32[2,4,64], index: 9, kind: output, shape index: {}]  }
   0x1 LB: > { %s1472_s10 = sadd.s32 4294967295, %s1568_s30   ;;  %p1476_p0 = scmp.ge.s32.totalorder %s1568_s30, 1  ;;  %s1568_s30 = sphi %s1630_s30, %s19_s30  }
   0x2   : > { %p287_p1 = scmp.lt.s32.totalorder %s1568_s30, 3 }
   0x4   : > { %p288_p2 = pnand %p1476_p0, %p287_p1 }
   0x5   : > { %p322_p3 = scmp.lt.s32.totalorder (!%p288_p2), %s1472_s10, 1  ;;  %s1572_s14 = smov (!%p288_p2), 17  }
   0x6   : > { %291 = sbr.rel (%p288_p2) target bundleno = 1410 (0x582), region = 56  ;;  %s1573_s15 = smov (!%p288_p2), 16  }
   0x7   : > { %s1574_s18 = smov (!%p288_p2), 15   ;;  %s1576_s22 = smov (!%p288_p2), 1  }
   0x8   : > { %s1577_s23 = smov (!%p288_p2), 111   ;;  %s1579_s25 = smov (!%p288_p2), 112  }
   0xb   : > { %v445_v0 = vlaneseq  ;;  %v1570_v1 = vmov 0.0   ;;  %v417_v2 = vld [vmem:[%s2004_s2] sm:$0xf]  ;;  %s2013_s10 = smov (!%p322_p3, %s1472_s10), 1  ;;  %v1571_v3 = vmov 0   ;;  %vm341_vm0 = vcmask 1043456  }
   0xc   : > { %331 = vst [vmem:[#allocation2] sm:$0xf] %v1570_v1  ;;  %332 = vst [vmem:[#allocation2 + $0xc] sm:$0xf] %v1570_v1  ;;  %410 = vmatprep.mubr.f32.mxu0 %v1570_v1  ;;  %1559 = vset.pattern.permute.xlu0 %v1571_v3  ;;  %v425_v4 = vld [vmem:[%s2005_s3] sm:$0xf] }
   0xd   : > { %v446_v5 = vshrl.u32 %v445_v0, 7  ;;  %1560 = vset.pattern.permute.xlu1 %v1571_v3  ;;  %420 = vperm.xlu0 %1559, %v417_v2   ;;  %v1489_v6 = vld [vmem:[%s2009_s7 + $0x10] ss:$8 sm:$0x3]  ;;  %s1505_s19 = sshll.u32 %s2013_s10, 3  ;;  %vm337_vm1 = vcmask 31744  }
   0xe   : > { %v1487_v7 = vld [vmem:[%s2009_s7 + $0x6] ss:$8 sm:$0x3]  ;;  %v1488_v10 = vld [vmem:[%s2009_s7 + $0x7] ss:$8 sm:$0x3]  ;;  %s326_s24 = scalar_lea.vmem %s2002_s0, %s1505_s19 }
   0xf   : > { %v1656_v8 = vsub.s32 0, %v446_v5  ;;  %v1658_v9 = vsub.s32 1, %v446_v5  ;;  %v1666_v11 = vld [vmem:[%s326_s24] sm:$0xff]  ;;  %s1575_s19 = smov 113   ;;  %s1578_s24 = smov 127   ;;  %vm472_vm2 = vcmask 138240  }
  0x10   : > { %v334_v12 = vld [vmem:[%s2003_s1] sm:$0xf]  ;;  %v336_v17 = vcombine.high %v1666_v11, %v1666_v11  ;;  %v1486_v20 = vld [vmem:[%s2009_s7 + $0x5] ss:$8 sm:$0x3]  ;;  %vm551_vm3 = vcmask 121856  }
  0x11   : > { %v725_v13 = vrot.slane %v1489_v6, %v1656_v8  ;;  %v729_v14 = vrot.slane %v1489_v6, %v1658_v9  ;;  %v650_v15 = vrot.slane %v1487_v7, %v1656_v8  ;;  %v654_v16 = vrot.slane %v1487_v7, %v1658_v9  ;;  %428 = vperm.xlu0 %1559, %v425_v4   ;;  %v1484_v21 = vld [vmem:[%s2009_s7 + $0x2] ss:$8 sm:$0x3]  ;;  %v443_v23 = vld [vmem:[%s2009_s7] ss:$8 sm:$0x3] }
  0x12   : > { %v687_v18 = vrot.slane %v1488_v10, %v1656_v8  ;;  %v691_v19 = vrot.slane %v1488_v10, %v1658_v9  ;;  %1480 = vmatprep.subr.msk.mxu0 %vm341_vm0, %v336_v17  ;;  %v527_v25 = vrot.slane %v1484_v21, %v1656_v8  ;;  %v531_v26 = vrot.slane %v1484_v21, %v1658_v9  ;;  %v1485_v30 = vld [vmem:[%s2009_s7 + $0x3] ss:$8 sm:$0x3]  ;;  %v1483_v37 = vld [vmem:[%s2009_s7 + $0x1] ss:$8 sm:$0x3] }
  0x13   : > { %v730_v22 = vcombine.low %v725_v13, %v729_v14  ;;  %1481 = vmatpush1.msk.msra.mxu0 %vm341_vm0, %v1666_v11  ;;  %v655_v27 = vcombine.low %v650_v15, %v654_v16  ;;  %v612_v28 = vrot.slane %v1486_v20, %v1656_v8  ;;  %v616_v29 = vrot.slane %v1486_v20, %v1658_v9  ;;  %v718_v44 = vld [vmem:[#allocation2 + $0xc] sm:$0xf]  ;;  %s1479_s21 = sshll.u32 %s2013_s10, 2 }
  0x14   : > { %v692_v24 = vcombine.low %v687_v18, %v691_v19  ;;  %1482 = vmatmul.mubr.msk.f32.vlgmr.msra.gmra.mxu0 %vm337_vm1, %v334_v12  ;;  %v532_v31 = vcombine.low %v527_v25, %v531_v26  ;;  %v448_v32 = vrot.slane %v443_v23, %v1656_v8  ;;  %v452_v33 = vrot.slane %v443_v23, %v1658_v9  ;;  %v643_v50 = vld [vmem:[#allocation2 + $0xc] sm:$0xf] }
  0x15   : > { %731 = vrot.lane.b32.xlu1 %v730_v22, %s1572_s14  ;;  %839 = vmatprep.mubr.f32.mxu0 %v1570_v1  ;;  %v617_v34 = vcombine.low %v612_v28, %v616_v29  ;;  %v566_v35 = vrot.slane %v1485_v30, %v1656_v8  ;;  %v570_v36 = vrot.slane %v1485_v30, %v1658_v9  ;;  %vm591_vm4 = vcmask 7168   ;;  %v680_v58 = vld [vmem:[#allocation2 + $0xc] sm:$0xf] }
  0x16   : > { %693 = vrot.lane.b32.xlu0 %v692_v24, %s1573_s15  ;;  %v453_v38 = vcombine.low %v448_v32, %v452_v33  ;;  %v487_v40 = vrot.slane %v1483_v37, %v1656_v8  ;;  %v491_v41 = vrot.slane %v1483_v37, %v1658_v9  ;;  %vm512_vm5 = vcmask 130048   ;;  %v605_v59 = vld [vmem:[#allocation2 + $0xc] sm:$0xf] }
  0x17   : > { %v571_v39 = vcombine.low %v566_v35, %v570_v36  ;;  %vm575_vm6 = vcmask 1039360   ;;  %vm536_vm7 = vcmask 924672   ;;  %vm496_vm8 = vcmask 916480  }
  0x18   : > { %v492_v42 = vcombine.low %v487_v40, %v491_v41  ;;  %vm457_vm9 = vcmask 908288   ;;  %vm765_vm10 = vcmask 293888   ;;  %vm1417_vm11 = vcmask 519168  }
  0x19   : > { %656 = vrot.lane.b32.xlu1 %v655_v27, %s1574_s18 }
  0x1a   : > { %533 = vrot.lane.b32.xlu0 %v532_v31, %s1575_s19 }
  0x1d   : > { %618 = vrot.lane.b32.xlu1 %v617_v34, %s1576_s22 }
  0x1e   : > { %454 = vrot.lane.b32.xlu0 %v453_v38, %s1577_s23 }
  0x21   : > { %572 = vrot.lane.b32.xlu1 %v571_v39, %s1578_s24 }
  0x25   : > { %493 = vrot.lane.b32.xlu1 %v492_v42, %s1579_s25 }
  0x87   : > { %v732_v43 = vpop.permute.xlu1 %731 }
  0x88   : > { %v733_v45 = vrot.slane %v732_v43, 4  ;;  %v421_v46 = vpop.permute.xlu0 %420 }
  0x8a   : > { %v734_v47 = vsel %vm472_vm2, %v733_v45, %v732_v43  ;;  %v738_v48 = vmul.f32 %v733_v45, %v718_v44 }
  0x8b   : > { %v657_v49 = vpop.permute.xlu1 %656 }
  0x8c   : > { %v658_v51 = vrot.slane %v657_v49, 4  ;;  %746 = vrot.lane.b32.xlu1 %v738_v48, %s1577_s23  ;;  %v429_v52 = vpop.permute.xlu0 %428 }
  0x8e   : > { %v659_v53 = vsel %vm551_vm3, %v658_v51, %v657_v49  ;;  %v663_v54 = vmul.f32 %v658_v51, %v643_v50 }
  0x8f   : > { %v619_v55 = vpop.permute.xlu1 %618 }
  0x90   : > { %v620_v56 = vrot.slane %v619_v55, 4  ;;  %671 = vrot.lane.b32.xlu0 %v663_v54, %s1575_s19  ;;  %v694_v57 = vpop.permute.xlu0 %693 }
  0x91   : > { %v695_v60 = vrot.slane %v694_v57, 4 }
  0x92   : > { %v621_v61 = vsel %vm591_vm4, %v620_v56, %v619_v55  ;;  %v625_v0 = vmul.f32 %v620_v56, %v605_v59  ;;  %v846_v56 = vld [vmem:[%s2007_s5] sm:$0xf] }
  0x93   : > { %v696_v62 = vsel %vm512_vm5, %v695_v60, %v694_v57  ;;  %v700_v63 = vmul.f32 %v695_v60, %v680_v58  ;;  %v573_v18 = vpop.permute.xlu1 %572  ;;  %v1499_v57 = vld [vmem:[%s2009_s7 + $0x10] ss:$8 sm:$0x3] }
  0x94   : > { %v629_v3 = vcombine.low %v625_v0, %v625_v0  ;;  %v574_v20 = vrot.slane %v573_v18, 4  ;;  %v534_v22 = vpop.permute.xlu0 %533  ;;  %v1139_v59 = vrot.slane %v1499_v57, %v1656_v8  ;;  %v1143_v60 = vrot.slane %v1499_v57, %v1658_v9 }
  0x95   : > { %v704_v2 = vcombine.low %v700_v63, %v700_v63  ;;  %v535_v25 = vrot.slane %v534_v22, 4 }
  0x96   : > { %v576_v24 = vsel %vm575_vm6, %v574_v20, %v573_v18  ;;  %v872_v18 = vld [vmem:[%s2009_s7] ss:$8 sm:$0x3] }
  0x97   : > { %709 = vrot.lane.b32.xlu0 %v704_v2, %s1579_s25  ;;  %v494_v26 = vpop.permute.xlu1 %493  ;;  %v537_v31 = vsel %vm536_vm7, %v535_v25, %v534_v22  ;;  %v1144_v2 = vcombine.low %v1139_v59, %v1143_v60 }
  0x98   : > { %v495_v32 = vrot.slane %v494_v26, 4  ;;  %v455_v33 = vpop.permute.xlu0 %454 }
  0x99   : > { %v456_v36 = vrot.slane %v455_v33, 4 }
  0x9a   : > { %v497_v37 = vsel %vm496_vm8, %v495_v32, %v494_v26 }
  0x9b   : > { %634 = vrot.lane.b32.xlu0 %v629_v3, %s1578_s24 }
  0xd4   : > { %v412_v4 = vpop.f32.mrf.mxu0 }
  0xd5   : > { %v423_v5 = vmul.f32 %v421_v46, %v412_v4 }
  0xd6   : > { %v414_v6 = vpop.f32.mrf.mxu0 }
  0xd7   : > { %v431_v7 = vadd.f32 %v429_v52, %v423_v5  ;;  %v424_v10 = vmul.f32 %v421_v46, %v414_v6  ;;  %v1496_v5 = vld [vmem:[%s2009_s7 + $0x5] ss:$8 sm:$0x3]  ;;  %v854_v6 = vld [vmem:[%s2008_s6] sm:$0xf] }
  0xd9   : > { %v432_v12 = vadd.f32 %v429_v52, %v424_v10  ;;  %v433_v13 = vmax.f32 %v431_v7, 0.0  ;;  %v1494_v7 = vld [vmem:[%s2009_s7 + $0x2] ss:$8 sm:$0x3] }
  0xdb   : > { %v434_v14 = vmax.f32 %v432_v12, 0.0  ;;  %v1029_v12 = vrot.slane %v1496_v5, %v1656_v8 }
  0xdd   : > { %v437_v15 = vcombine.low %v433_v13, %v434_v14  ;;  %v1033_v13 = vrot.slane %v1496_v5, %v1658_v9 }
  0xdf   : > { %v439_v16 = vadd.f32 %v437_v15, %v1666_v11  ;;  %v1495_v15 = vld [vmem:[%s2009_s7 + $0x3] ss:$8 sm:$0x3] }
  0xe1   : > { %440 = vst [vmem:[#allocation2 + $0x4] sm:$0xff] %v439_v16  ;;  %v699_v17 = vmul.f32 %v696_v62, %v439_v16  ;;  %v737_v19 = vmul.f32 %v734_v47, %v439_v16  ;;  %602 = vst [vmem:[#allocation3 + $0x48] sm:$0xf] %v439_v16  ;;  %v600_v21 = vcombine.high %v439_v16, %v439_v16  ;;  %v1498_v62 = vld [vmem:[%s2009_s7 + $0x7] ss:$8 sm:$0x3] }
  0xe2   : > { %v662_v23 = vmul.f32 %v659_v53, %v439_v16  ;;  %v624_v28 = vmul.f32 %v621_v61, %v439_v16  ;;  %v458_v47 = vsel %vm457_vm9, %v456_v36, %v455_v33  ;;  %v1497_v61 = vld [vmem:[%s2009_s7 + $0x6] ss:$8 sm:$0x3]  ;;  %v1102_v3 = vrot.slane %v1498_v62, %v1656_v8 }
  0xe3   : > { %742 = vrot.lane.b32.xlu0 %v737_v19, %s1577_s23  ;;  %707 = vrot.lane.b32.xlu1 %v699_v17, %s1579_s25  ;;  %603 = vst [vmem:[#allocation3 + $0x28] sm:$0xf] %v600_v21  ;;  %v741_v41 = vcombine.high %v737_v19, %v737_v19  ;;  %v703_v45 = vcombine.low %v699_v17, %v699_v17 }
  0xe4   : > { %v666_v42 = vcombine.high %v662_v23, %v662_v23  ;;  %v628_v46 = vcombine.low %v624_v28, %v624_v28  ;;  %v1066_v63 = vrot.slane %v1497_v61, %v1656_v8  ;;  %v1070_v0 = vrot.slane %v1497_v61, %v1658_v9 }
  0xe5   : > { %v1106_v4 = vrot.slane %v1498_v62, %v1658_v9  ;;  %v950_v16 = vrot.slane %v1494_v7, %v1656_v8  ;;  %v954_v17 = vrot.slane %v1494_v7, %v1658_v9  ;;  %v1034_v19 = vcombine.low %v1029_v12, %v1033_v13 }
  0xe6   : > { %v1071_v10 = vcombine.low %v1066_v63, %v1070_v0  ;;  %v990_v21 = vrot.slane %v1495_v15, %v1658_v9 }
  0xe7   : > { %667 = vrot.lane.b32.xlu1 %v662_v23, %s1575_s19  ;;  %v1107_v14 = vcombine.low %v1102_v3, %v1106_v4  ;;  %v955_v22 = vcombine.low %v950_v16, %v954_v17  ;;  %v1493_v23 = vld [vmem:[%s2009_s7 + $0x1] ss:$8 sm:$0x3] }
  0xe8   : > { %v558_v27 = vld [vmem:[#allocation2] sm:$0xff]  ;;  %v520_v30 = vld [vmem:[#allocation2 + $0x8] sm:$0xf]  ;;  %v913_v26 = vrot.slane %v1493_v23, %v1656_v8 }
  0xe9   : > { %v579_v29 = vmul.f32 %v576_v24, %v558_v27  ;;  %v540_v34 = vmul.f32 %v558_v27, %v537_v31  ;;  %v541_v35 = vmul.f32 %v535_v25, %v520_v30  ;;  %v442_v38 = vld [vmem:[#allocation2 + $0x8] sm:$0xf]  ;;  %v500_v39 = vmul.f32 %v558_v27, %v497_v37 }
  0xea   : > { %v462_v40 = vmul.f32 %v456_v36, %v442_v38  ;;  %v559_v43 = vld [vmem:[#allocation2 + $0x8] sm:$0xf]  ;;  %v461_v48 = vmul.f32 %v558_v27, %v458_v47  ;;  %v877_v24 = vrot.slane %v872_v18, %v1656_v8  ;;  %v881_v25 = vrot.slane %v872_v18, %v1658_v9  ;;  %v754_v18 = vld [vmem:[%s2006_s4] sm:$0xf] }
  0xeb   : > { %587 = vrot.lane.b32.xlu0 %v579_v29, %s1576_s22  ;;  %632 = vrot.lane.b32.xlu1 %v624_v28, %s1578_s24  ;;  %v580_v44 = vmul.f32 %v574_v20, %v559_v43  ;;  %v544_v49 = vcombine.high %v540_v34, %v540_v34  ;;  %v480_v51 = vld [vmem:[#allocation2 + $0x8] sm:$0xf]  ;;  %v583_v54 = vcombine.low %v579_v29, %v579_v29 }
  0xec   : > { %v501_v52 = vmul.f32 %v495_v32, %v480_v51  ;;  %v465_v53 = vcombine.high %v461_v48, %v461_v48  ;;  %v504_v58 = vcombine.low %v500_v39, %v500_v39  ;;  %v986_v20 = vrot.slane %v1495_v15, %v1656_v8 }
  0xed   : > { %v584_v50 = vcombine.low %v580_v44, %v580_v44  ;;  %v917_v28 = vrot.slane %v1493_v23, %v1658_v9  ;;  %v882_v29 = vcombine.low %v877_v24, %v881_v25  ;;  %v1060_v25 = vld [vmem:[#allocation2 + $0xc] sm:$0xf] }
  0xee   : > { %v505_v55 = vcombine.low %v501_v52, %v501_v52  ;;  %v991_v27 = vcombine.low %v986_v20, %v990_v21 }
  0xef   : > { %545 = vrot.lane.b32.xlu0 %v540_v34, %s1574_s18  ;;  %549 = vrot.lane.b32.xlu1 %v541_v35, %s1574_s18  ;;  %v918_v30 = vcombine.low %v913_v26, %v917_v28 }
  0xf3   : > { %508 = vrot.lane.b32.xlu0 %v500_v39, %s1573_s15  ;;  %470 = vrot.lane.b32.xlu1 %v462_v40, %s1572_s14 }
  0xf7   : > { %744 = vrot.lane.b32.xlu0 %v741_v41, %s1577_s23  ;;  %669 = vrot.lane.b32.xlu1 %v666_v42, %s1575_s19 }
  0xfb   : > { %705 = vrot.lane.b32.xlu0 %v703_v45, %s1579_s25  ;;  %630 = vrot.lane.b32.xlu1 %v628_v46, %s1578_s24 }
  0xfe   : > { %v747_v33 = vpop.permute.xlu1 %746 }
  0xff   : > { %547 = vrot.lane.b32.xlu0 %v544_v49, %s1574_s18  ;;  %589 = vrot.lane.b32.xlu1 %v584_v50, %s1576_s22 }
 0x102   : > { %v672_v31 = vpop.permute.xlu0 %671 }
 0x103   : > { %468 = vrot.lane.b32.xlu0 %v465_v53, %s1572_s14  ;;  %585 = vrot.lane.b32.xlu1 %v583_v54, %s1576_s22 }
 0x107   : > { %466 = vrot.lane.b32.xlu0 %v461_v48, %s1572_s14  ;;  %510 = vrot.lane.b32.xlu1 %v505_v55, %s1573_s15 }
 0x109   : > { %v710_v32 = vpop.permute.xlu0 %709 }
 0x10b   : > { %849 = vperm.xlu0 %1559, %v846_v56   ;;  %506 = vrot.lane.b32.xlu1 %v504_v58, %s1573_s15 }
 0x10d   : > { %v635_v34 = vpop.permute.xlu0 %634 }
 0x10f   : > { %857 = vperm.xlu1 %1560, %v854_v6   ;;  %1145 = vrot.lane.b32.xlu0 %v1144_v2, %s1572_s14 }
 0x113   : > { %1072 = vrot.lane.b32.xlu1 %v1071_v10, %s1574_s18  ;;  %1108 = vrot.lane.b32.xlu0 %v1107_v14, %s1573_s15 }
 0x117   : > { %1035 = vrot.lane.b32.xlu1 %v1034_v19, %s1576_s22  ;;  %956 = vrot.lane.b32.xlu0 %v955_v22, %s1575_s19 }
 0x11b   : > { %992 = vrot.lane.b32.xlu1 %v991_v27, %s1578_s24  ;;  %883 = vrot.lane.b32.xlu0 %v882_v29, %s1577_s23  ;;  %v1096_v29 = vld [vmem:[#allocation2 + $0xc] sm:$0xf] }
 0x11f   : > { %919 = vrot.lane.b32.xlu1 %v918_v30, %s1579_s25 }
 0x155   : > { %v708_v8 = vpop.permute.xlu1 %707  ;;  %v743_v36 = vpop.permute.xlu0 %742 }
 0x156   : > { %v712_v35 = vsel %vm496_vm8, %v708_v8, %v710_v32 }
 0x157   : > { %716 = vst [vmem:[#allocation3 + $0x20] sm:$0xf0] %v712_v35  ;;  %v1023_v35 = vld [vmem:[#allocation2 + $0xc] sm:$0xf] }
 0x159   : > { %v668_v37 = vpop.permute.xlu1 %667 }
 0x15d   : > { %v588_v38 = vpop.permute.xlu0 %587  ;;  %v633_v9 = vpop.permute.xlu1 %632 }
 0x15e   : > { %v637_v39 = vsel %vm575_vm6, %v633_v9, %v635_v34 }
 0x15f   : > { %641 = vst [vmem:[#allocation3 + $0x28] sm:$0xf0] %v637_v39 }
 0x161   : > { %v546_v40 = vpop.permute.xlu0 %545  ;;  %v550_v41 = vpop.permute.xlu1 %549 }
 0x165   : > { %v509_v42 = vpop.permute.xlu0 %508  ;;  %v471_v43 = vpop.permute.xlu1 %470 }
 0x166   : > { %v760_v4 = vld [vmem:[#allocation3 + $0x28] sm:$0xff] }
 0x169   : > { %v745_v44 = vpop.permute.xlu0 %744  ;;  %v670_v45 = vpop.permute.xlu1 %669 }
 0x16a   : > { %v748_v46 = vsel %vm457_vm9, %v743_v36, %v745_v44  ;;  %v749_v47 = vsel %vm457_vm9, %v745_v44, %v747_v33  ;;  %v673_v48 = vsel %vm536_vm7, %v668_v37, %v670_v45  ;;  %v674_v49 = vsel %vm536_vm7, %v670_v45, %v672_v31 }
 0x16b   : > { %752 = vst [vmem:[#allocation3 + $0x40] sm:$0xf] %v748_v46  ;;  %753 = vst [vmem:[#allocation3 + $0x38] sm:$0xf] %v749_v47 }
 0x16c   : > { %677 = vst [vmem:[#allocation3 + $0x8] sm:$0xf] %v673_v48  ;;  %678 = vst [vmem:[#allocation3 + $0x20] sm:$0xf] %v674_v49 }
 0x16d   : > { %v706_v50 = vpop.permute.xlu0 %705  ;;  %v631_v51 = vpop.permute.xlu1 %630 }
 0x16e   : > { %v711_v52 = vsel %vm496_vm8, %v706_v50, %v708_v8  ;;  %v636_v53 = vsel %vm575_vm6, %v631_v51, %v633_v9 }
 0x16f   : > { %715 = vst [vmem:[#allocation3 + $0x8] sm:$0xf0] %v711_v52  ;;  %640 = vst [vmem:[#allocation3 + $0x48] sm:$0xf0] %v636_v53 }
 0x171   : > { %v548_v54 = vpop.permute.xlu0 %547  ;;  %v590_v55 = vpop.permute.xlu1 %589 }
 0x172   : > { %v552_v56 = vsel %vm551_vm3, %v546_v40, %v548_v54  ;;  %v553_v57 = vsel %vm551_vm3, %v548_v54, %v550_v41  ;;  %v764_v58 = vld [vmem:[#allocation3 + $0x38] sm:$0xf]  ;;  %v763_v59 = vld [vmem:[#allocation3 + $0x40] sm:$0xf]  ;;  %v593_v60 = vsel %vm591_vm4, %v588_v38, %v590_v55 }
 0x173   : > { %556 = vst [vmem:[#allocation3 + $0x18] sm:$0xf] %v552_v56  ;;  %557 = vst [vmem:[#allocation3 + $0x10] sm:$0xf] %v553_v57  ;;  %1490 = vmatprep.subr.msk.mxu0 %vm341_vm0, %v764_v58  ;;  %v762_v61 = vld [vmem:[#allocation3 + $0x20] sm:$0xff] }
 0x174   : > { %597 = vst [vmem:[#allocation3 + $0x10] sm:$0xf0] %v593_v60  ;;  %1491 = vmatpush1.msk.msra.mxu0 %vm341_vm0, %v763_v59 }
 0x175   : > { %v469_v62 = vpop.permute.xlu0 %468  ;;  %799 = vmatprep.subr.mxu0 %v762_v61  ;;  %v586_v63 = vpop.permute.xlu1 %585 }
 0x176   : > { %v474_v0 = vsel %vm472_vm2, %v469_v62, %v471_v43  ;;  %v761_v2 = vld [vmem:[#allocation3 + $0x8] sm:$0xff]  ;;  %v592_v3 = vsel %vm591_vm4, %v586_v63, %v588_v38 }
 0x177   : > { %478 = vst [vmem:[#allocation3] sm:$0xf] %v474_v0  ;;  %800 = vmatpush1.msra.mxu0 %v761_v2  ;;  %596 = vst [vmem:[#allocation3 + $0x18] sm:$0xf0] %v592_v3  ;;  %v759_v5 = vld [vmem:[#allocation3 + $0x48] sm:$0xff] }
 0x178   : > { %801 = vmatprep.subr.mxu0 %v760_v4 }
 0x179   : > { %v467_v6 = vpop.permute.xlu0 %466  ;;  %802 = vmatpush1.msra.mxu0 %v759_v5  ;;  %v511_v7 = vpop.permute.xlu1 %510 }
 0x17a   : > { %v473_v10 = vsel %vm472_vm2, %v467_v6, %v469_v62  ;;  %v514_v12 = vsel %vm512_vm5, %v509_v42, %v511_v7 }
 0x17b   : > { %v758_v13 = vld [vmem:[#allocation3 + $0x10] sm:$0xff]  ;;  %477 = vst [vmem:[#allocation3 + $0x30] sm:$0xf] %v473_v10  ;;  %518 = vst [vmem:[#allocation3] sm:$0xf0] %v514_v12 }
 0x17c   : > { %803 = vmatprep.subr.mxu0 %v758_v13 }
 0x17d   : > { %v507_v14 = vpop.permute.xlu1 %506 }
 0x17e   : > { %v513_v15 = vsel %vm512_vm5, %v507_v14, %v509_v42  ;;  %v757_v16 = vld [vmem:[#allocation3 + $0x18] sm:$0xff] }
 0x17f   : > { %517 = vst [vmem:[#allocation3 + $0x30] sm:$0xf0] %v513_v15  ;;  %804 = vmatpush1.msra.mxu0 %v757_v16 }
 0x182   : > { %v756_v17 = vld [vmem:[#allocation3] sm:$0xff] }
 0x183   : > { %805 = vmatprep.subr.mxu0 %v756_v17 }
 0x186   : > { %v755_v19 = vld [vmem:[#allocation3 + $0x30] sm:$0xff]  ;;  %v850_v20 = vpop.permute.xlu0 %849 }
 0x187   : > { %806 = vmatpush1.msra.mxu0 %v755_v19 }
 0x188   : > { %1492 = vmatmul.mubr.msk.f32.vlgmr.msra.gmra.mxu0 %vm765_vm10, %v754_v18 }
 0x189   : > { %1252 = vmatprep.mubr.f32.mxu0 %v1570_v1  ;;  %v1133_v1 = vld [vmem:[#allocation2 + $0xc] sm:$0xf] }
 0x18a   : > { %v858_v21 = vpop.permute.xlu1 %857  ;;  %v1146_v22 = vpop.permute.xlu0 %1145 }
 0x18b   : > { %v1147_v30 = vrot.slane %v1146_v22, 4 }
 0x18d   : > { %v1148_v33 = vsel %vm472_vm2, %v1147_v30, %v1146_v22  ;;  %v1152_v36 = vmul.f32 %v1147_v30, %v1133_v1 }
 0x18e   : > { %v1073_v23 = vpop.permute.xlu1 %1072  ;;  %v1109_v26 = vpop.permute.xlu0 %1108 }
 0x18f   : > { %v1074_v24 = vrot.slane %v1073_v23, 4  ;;  %v1110_v28 = vrot.slane %v1109_v26, 4  ;;  %1160 = vrot.lane.b32.xlu1 %v1152_v36, %s1577_s23 }
 0x191   : > { %v1079_v27 = vmul.f32 %v1074_v24, %v1060_v25  ;;  %v1115_v31 = vmul.f32 %v1110_v28, %v1096_v29  ;;  %v1075_v37 = vsel %vm551_vm3, %v1074_v24, %v1073_v23  ;;  %v1111_v9 = vsel %vm512_vm5, %v1110_v28, %v1109_v26  ;;  %v1259_v29 = vld [vmem:[%s2007_s5] sm:$0xf] }
 0x192   : > { %v1036_v32 = vpop.permute.xlu1 %1035  ;;  %v957_v56 = vpop.permute.xlu0 %956 }
 0x193   : > { %1087 = vrot.lane.b32.xlu0 %v1079_v27, %s1575_s19  ;;  %v1037_v34 = vrot.slane %v1036_v32, 4  ;;  %v1119_v8 = vcombine.low %v1115_v31, %v1115_v31  ;;  %v958_v59 = vrot.slane %v957_v56, 4  ;;  %v1267_v31 = vld [vmem:[%s2008_s6] sm:$0xf] }
 0x195   : > { %v1042_v38 = vmul.f32 %v1037_v34, %v1023_v35  ;;  %v1038_v40 = vsel %vm591_vm4, %v1037_v34, %v1036_v32  ;;  %v959_v0 = vsel %vm536_vm7, %v958_v59, %v957_v56 }
 0x196   : > { %v993_v53 = vpop.permute.xlu1 %992  ;;  %v884_v3 = vpop.permute.xlu0 %883 }
 0x197   : > { %1124 = vrot.lane.b32.xlu0 %v1119_v8, %s1579_s25  ;;  %v1046_v39 = vcombine.low %v1042_v38, %v1042_v38  ;;  %v994_v54 = vrot.slane %v993_v53, 4  ;;  %v885_v6 = vrot.slane %v884_v3, 4 }
 0x199   : > { %v995_v58 = vsel %vm575_vm6, %v994_v54, %v993_v53 }
 0x19a   : > { %v920_v60 = vpop.permute.xlu1 %919 }
 0x19b   : > { %1051 = vrot.lane.b32.xlu0 %v1046_v39, %s1578_s24  ;;  %v921_v2 = vrot.slane %v920_v60, 4 }
 0x19d   : > { %v922_v7 = vsel %vm496_vm8, %v921_v2, %v920_v60 }
 0x201   : > { %v1161_v34 = vpop.permute.xlu1 %1160 }
 0x205   : > { %v1088_v32 = vpop.permute.xlu0 %1087 }
 0x248   : > { %v841_v41 = vpop.f32.mrf.mxu0 }
 0x249   : > { %v852_v42 = vmul.f32 %v850_v20, %v841_v41 }
 0x24a   : > { %v843_v43 = vpop.f32.mrf.mxu0 }
 0x24b   : > { %v860_v44 = vadd.f32 %v858_v21, %v852_v42  ;;  %v853_v45 = vmul.f32 %v850_v20, %v843_v43  ;;  %v886_v20 = vsel %vm457_vm9, %v885_v6, %v884_v3 }
 0x24d   : > { %v861_v46 = vadd.f32 %v858_v21, %v853_v45  ;;  %v862_v47 = vmax.f32 %v860_v44, 0.0 }
 0x24f   : > { %v863_v48 = vmax.f32 %v861_v46, 0.0 }
 0x251   : > { %v866_v49 = vcombine.low %v862_v47, %v863_v48 }
 0x253   : > { %v868_v50 = vadd.f32 %v866_v49, %v1666_v11 }
 0x255   : > { %869 = vst [vmem:[#allocation2 + $0x4] sm:$0xff] %v868_v50  ;;  %v1151_v51 = vmul.f32 %v1148_v33, %v868_v50  ;;  %v1114_v52 = vmul.f32 %v1111_v9, %v868_v50  ;;  %1020 = vst [vmem:[#allocation3 + $0x48] sm:$0xf] %v868_v50  ;;  %v1018_v55 = vcombine.high %v868_v50, %v868_v50  ;;  %v1125_v33 = vpop.permute.xlu0 %1124 }
 0x256   : > { %v1078_v57 = vmul.f32 %v1075_v37, %v868_v50  ;;  %v1041_v61 = vmul.f32 %v1038_v40, %v868_v50 }
 0x257   : > { %1156 = vrot.lane.b32.xlu0 %v1151_v51, %s1577_s23  ;;  %1122 = vrot.lane.b32.xlu1 %v1114_v52, %s1579_s25  ;;  %1021 = vst [vmem:[#allocation3 + $0x28] sm:$0xf] %v1018_v55  ;;  %v1155_v14 = vcombine.high %v1151_v51, %v1151_v51  ;;  %v1118_v18 = vcombine.low %v1114_v52, %v1114_v52 }
 0x258   : > { %v1082_v15 = vcombine.high %v1078_v57, %v1078_v57  ;;  %v1045_v19 = vcombine.low %v1041_v61, %v1041_v61 }
 0x259   : > { %v1052_v8 = vpop.permute.xlu0 %1051 }
 0x25b   : > { %1083 = vrot.lane.b32.xlu1 %v1078_v57, %s1575_s19 }
 0x25c   : > { %v979_v11 = vld [vmem:[#allocation2] sm:$0xff]  ;;  %v944_v63 = vld [vmem:[#allocation2 + $0x8] sm:$0xf] }
 0x25d   : > { %v998_v62 = vmul.f32 %v995_v58, %v979_v11  ;;  %v962_v4 = vmul.f32 %v979_v11, %v959_v0  ;;  %v963_v5 = vmul.f32 %v958_v59, %v944_v63  ;;  %v871_v10 = vld [vmem:[#allocation2 + $0x8] sm:$0xf]  ;;  %v925_v12 = vmul.f32 %v979_v11, %v922_v7 }
 0x25e   : > { %v890_v13 = vmul.f32 %v885_v6, %v871_v10  ;;  %v980_v16 = vld [vmem:[#allocation2 + $0x8] sm:$0xf]  ;;  %v889_v21 = vmul.f32 %v979_v11, %v886_v20 }
 0x25f   : > { %1006 = vrot.lane.b32.xlu0 %v998_v62, %s1576_s22  ;;  %1049 = vrot.lane.b32.xlu1 %v1041_v61, %s1578_s24  ;;  %v999_v17 = vmul.f32 %v994_v54, %v980_v16  ;;  %v966_v22 = vcombine.high %v962_v4, %v962_v4  ;;  %v907_v24 = vld [vmem:[#allocation2 + $0x8] sm:$0xf]  ;;  %v1002_v27 = vcombine.low %v998_v62, %v998_v62 }
 0x260   : > { %v926_v25 = vmul.f32 %v921_v2, %v907_v24  ;;  %v893_v26 = vcombine.high %v889_v21, %v889_v21  ;;  %v929_v30 = vcombine.low %v925_v12, %v925_v12 }
 0x261   : > { %v1003_v23 = vcombine.low %v999_v17, %v999_v17  ;;  %v1168_v17 = vld [vmem:[%s2006_s4] sm:$0xf] }
 0x262   : > { %v930_v28 = vcombine.low %v926_v25, %v926_v25 }
 0x263   : > { %967 = vrot.lane.b32.xlu0 %v962_v4, %s1574_s18  ;;  %971 = vrot.lane.b32.xlu1 %v963_v5, %s1574_s18 }
 0x267   : > { %933 = vrot.lane.b32.xlu0 %v925_v12, %s1573_s15  ;;  %898 = vrot.lane.b32.xlu1 %v890_v13, %s1572_s14 }
 0x26b   : > { %1158 = vrot.lane.b32.xlu0 %v1155_v14, %s1577_s23  ;;  %1085 = vrot.lane.b32.xlu1 %v1082_v15, %s1575_s19 }
 0x26f   : > { %1120 = vrot.lane.b32.xlu0 %v1118_v18, %s1579_s25  ;;  %1047 = vrot.lane.b32.xlu1 %v1045_v19, %s1578_s24  ;;  %v1284_v19 = vld [vmem:[#allocation2 + $0xc] sm:$0xf] }
 0x273   : > { %969 = vrot.lane.b32.xlu0 %v966_v22, %s1574_s18  ;;  %1008 = vrot.lane.b32.xlu1 %v1003_v23, %s1576_s22  ;;  %s330_s18 = scalar_lea.vmem %s2011_s9, %s1479_s21 }
 0x277   : > { %896 = vrot.lane.b32.xlu0 %v893_v26, %s1572_s14  ;;  %1004 = vrot.lane.b32.xlu1 %v1002_v27, %s1576_s22 }
 0x27b   : > { %894 = vrot.lane.b32.xlu0 %v889_v21, %s1572_s14  ;;  %935 = vrot.lane.b32.xlu1 %v930_v28, %s1573_s15 }
 0x27f   : > { %1262 = vperm.xlu0 %1559, %v1259_v29   ;;  %931 = vrot.lane.b32.xlu1 %v929_v30, %s1573_s15  ;;  %v1343_v29 = vld [vmem:[%s2010_s8 + $0xf8] sm:$0xff] }
 0x280   : > { %v1327_v30 = vld [vmem:[%s2010_s8 + $0x78] sm:$0xff]  ;;  %1506 = vmatprep.subr.mxu1 %v1343_v29 }
 0x281   : > { %1507 = vmatpush3.msra.mxu1 %v1327_v30 }
 0x283   : > { %1270 = vperm.xlu1 %1560, %v1267_v31   ;;  %v1342_v31 = vld [vmem:[%s2010_s8 + $0xf0] sm:$0xff] }
 0x284   : > { %1508 = vmatprep.subr.mxu1 %v1342_v31 }
 0x287   : > { %1289 = vrot.lane.b32.xlu1 %v1284_v19, %s1578_s24 }
 0x2c9   : > { %v1123_v1 = vpop.permute.xlu1 %1122  ;;  %v1157_v36 = vpop.permute.xlu0 %1156 }
 0x2ca   : > { %v1127_v35 = vsel %vm496_vm8, %v1123_v1, %v1125_v33  ;;  %v1326_v33 = vld [vmem:[%s2010_s8 + $0x70] sm:$0xff] }
 0x2cb   : > { %1131 = vst [vmem:[#allocation3 + $0x20] sm:$0xf0] %v1127_v35  ;;  %v1325_v35 = vld [vmem:[%s2010_s8 + $0x68] sm:$0xff]  ;;  %1509 = vmatpush3.msra.mxu1 %v1326_v33 }
 0x2cd   : > { %v1084_v37 = vpop.permute.xlu1 %1083 }
 0x2d1   : > { %v1007_v38 = vpop.permute.xlu0 %1006  ;;  %v1050_v9 = vpop.permute.xlu1 %1049 }
 0x2d2   : > { %v1054_v39 = vsel %vm575_vm6, %v1050_v9, %v1052_v8 }
 0x2d3   : > { %1058 = vst [vmem:[#allocation3 + $0x28] sm:$0xf0] %v1054_v39  ;;  %v1323_v39 = vld [vmem:[%s2010_s8 + $0x58] sm:$0xff] }
 0x2d5   : > { %v968_v40 = vpop.permute.xlu0 %967  ;;  %v972_v41 = vpop.permute.xlu1 %971 }
 0x2d9   : > { %v934_v42 = vpop.permute.xlu0 %933  ;;  %v899_v43 = vpop.permute.xlu1 %898 }
 0x2da   : > { %v1174_v3 = vld [vmem:[#allocation3 + $0x28] sm:$0xff] }
 0x2dd   : > { %v1159_v44 = vpop.permute.xlu0 %1158  ;;  %v1086_v45 = vpop.permute.xlu1 %1085 }
 0x2de   : > { %v1162_v46 = vsel %vm457_vm9, %v1157_v36, %v1159_v44  ;;  %v1163_v47 = vsel %vm457_vm9, %v1159_v44, %v1161_v34  ;;  %v1089_v48 = vsel %vm536_vm7, %v1084_v37, %v1086_v45  ;;  %v1090_v49 = vsel %vm536_vm7, %v1086_v45, %v1088_v32  ;;  %v1341_v34 = vld [vmem:[%s2010_s8 + $0xe8] sm:$0xff]  ;;  %v1340_v36 = vld [vmem:[%s2010_s8 + $0xe0] sm:$0xff] }
 0x2df   : > { %1166 = vst [vmem:[#allocation3 + $0x40] sm:$0xf] %v1162_v46  ;;  %1167 = vst [vmem:[#allocation3 + $0x38] sm:$0xf] %v1163_v47  ;;  %1510 = vmatprep.subr.mxu1 %v1341_v34  ;;  %v1336_v44 = vld [vmem:[%s2010_s8 + $0xc0] sm:$0xff]  ;;  %v1335_v46 = vld [vmem:[%s2010_s8 + $0xb8] sm:$0xff] }
 0x2e0   : > { %1093 = vst [vmem:[#allocation3 + $0x8] sm:$0xf] %v1089_v48  ;;  %1094 = vst [vmem:[#allocation3 + $0x20] sm:$0xf] %v1090_v49  ;;  %1511 = vmatpush3.msra.mxu1 %v1325_v35  ;;  %v1320_v45 = vld [vmem:[%s2010_s8 + $0x40] sm:$0xff]  ;;  %v1319_v47 = vld [vmem:[%s2010_s8 + $0x38] sm:$0xff] }
 0x2e1   : > { %v1121_v50 = vpop.permute.xlu0 %1120  ;;  %v1048_v51 = vpop.permute.xlu1 %1047  ;;  %1512 = vmatprep.subr.mxu1 %v1340_v36  ;;  %v1334_v48 = vld [vmem:[%s2010_s8 + $0xb0] sm:$0xff] }
 0x2e2   : > { %v1126_v52 = vsel %vm496_vm8, %v1121_v50, %v1123_v1  ;;  %v1053_v53 = vsel %vm575_vm6, %v1048_v51, %v1050_v9  ;;  %v1339_v9 = vld [vmem:[%s2010_s8 + $0xd8] sm:$0xff]  ;;  %v1318_v49 = vld [vmem:[%s2010_s8 + $0x30] sm:$0xff]  ;;  %v1333_v50 = vld [vmem:[%s2010_s8 + $0xa8] sm:$0xff] }
 0x2e3   : > { %1130 = vst [vmem:[#allocation3 + $0x8] sm:$0xf0] %v1126_v52  ;;  %1057 = vst [vmem:[#allocation3 + $0x48] sm:$0xf0] %v1053_v53  ;;  %v1317_v51 = vld [vmem:[%s2010_s8 + $0x28] sm:$0xff]  ;;  %v1332_v52 = vld [vmem:[%s2010_s8 + $0xa0] sm:$0xff] }
 0x2e4   : > { %v1316_v53 = vld [vmem:[%s2010_s8 + $0x20] sm:$0xff] }
 0x2e5   : > { %v970_v54 = vpop.permute.xlu0 %969  ;;  %v1009_v55 = vpop.permute.xlu1 %1008 }
 0x2e6   : > { %v973_v56 = vsel %vm551_vm3, %v968_v40, %v970_v54  ;;  %v974_v57 = vsel %vm551_vm3, %v970_v54, %v972_v41  ;;  %v1178_v58 = vld [vmem:[#allocation3 + $0x38] sm:$0xf]  ;;  %v1177_v59 = vld [vmem:[#allocation3 + $0x40] sm:$0xf]  ;;  %v1011_v60 = vsel %vm591_vm4, %v1007_v38, %v1009_v55  ;;  %v1331_v54 = vld [vmem:[%s2010_s8 + $0x98] sm:$0xff] }
 0x2e7   : > { %977 = vst [vmem:[#allocation3 + $0x18] sm:$0xf] %v973_v56  ;;  %978 = vst [vmem:[#allocation3 + $0x10] sm:$0xf] %v974_v57  ;;  %1500 = vmatprep.subr.msk.mxu0 %vm341_vm0, %v1178_v58  ;;  %v1176_v11 = vld [vmem:[#allocation3 + $0x20] sm:$0xff]  ;;  %v1315_v55 = vld [vmem:[%s2010_s8 + $0x18] sm:$0xff] }
 0x2e8   : > { %1015 = vst [vmem:[#allocation3 + $0x10] sm:$0xf0] %v1011_v60  ;;  %1501 = vmatpush1.msk.msra.mxu0 %vm341_vm0, %v1177_v59  ;;  %v1338_v40 = vld [vmem:[%s2010_s8 + $0xd0] sm:$0xff]  ;;  %v1329_v58 = vld [vmem:[%s2010_s8 + $0x88] sm:$0xff] }
 0x2e9   : > { %v897_v61 = vpop.permute.xlu0 %896  ;;  %1212 = vmatprep.subr.mxu0 %v1176_v11  ;;  %v1005_v62 = vpop.permute.xlu1 %1004  ;;  %v1322_v41 = vld [vmem:[%s2010_s8 + $0x50] sm:$0xff]  ;;  %v1313_v59 = vld [vmem:[%s2010_s8 + $0x8] sm:$0xff]  ;;  %v1328_v11 = vld [vmem:[%s2010_s8 + $0x80] sm:$0xff] }
 0x2ea   : > { %v901_v63 = vsel %vm472_vm2, %v897_v61, %v899_v43  ;;  %v1175_v0 = vld [vmem:[#allocation3 + $0x8] sm:$0xff]  ;;  %v1010_v2 = vsel %vm591_vm4, %v1005_v62, %v1007_v38  ;;  %v1324_v38 = vld [vmem:[%s2010_s8 + $0x60] sm:$0xff]  ;;  %v1321_v43 = vld [vmem:[%s2010_s8 + $0x48] sm:$0xff] }
 0x2eb   : > { %905 = vst [vmem:[#allocation3] sm:$0xf] %v901_v63  ;;  %1213 = vmatpush1.msra.mxu0 %v1175_v0  ;;  %1014 = vst [vmem:[#allocation3 + $0x18] sm:$0xf0] %v1010_v2  ;;  %v1173_v4 = vld [vmem:[#allocation3 + $0x48] sm:$0xff]  ;;  %1513 = vmatpush3.msra.mxu1 %v1324_v38  ;;  %v1330_v56 = vld [vmem:[%s2010_s8 + $0x90] sm:$0xff] }
 0x2ec   : > { %1214 = vmatprep.subr.mxu0 %v1174_v3  ;;  %1514 = vmatprep.subr.mxu1 %v1339_v9  ;;  %v1314_v57 = vld [vmem:[%s2010_s8 + $0x10] sm:$0xff]  ;;  %v1312_v62 = vld [vmem:[%s2010_s8] sm:$0xff] }
 0x2ed   : > { %v895_v5 = vpop.permute.xlu0 %894  ;;  %1215 = vmatpush1.msra.mxu0 %v1173_v4  ;;  %v936_v6 = vpop.permute.xlu1 %935  ;;  %1515 = vmatpush3.msra.mxu1 %v1323_v39 }
 0x2ee   : > { %v900_v7 = vsel %vm472_vm2, %v895_v5, %v897_v61  ;;  %v938_v10 = vsel %vm512_vm5, %v934_v42, %v936_v6  ;;  %1516 = vmatprep.subr.mxu1 %v1338_v40 }
 0x2ef   : > { %v1172_v12 = vld [vmem:[#allocation3 + $0x10] sm:$0xff]  ;;  %904 = vst [vmem:[#allocation3 + $0x30] sm:$0xf] %v900_v7  ;;  %942 = vst [vmem:[#allocation3] sm:$0xf0] %v938_v10  ;;  %1517 = vmatpush3.msra.mxu1 %v1322_v41 }
 0x2f0   : > { %1216 = vmatprep.subr.mxu0 %v1172_v12 }
 0x2f1   : > { %v932_v13 = vpop.permute.xlu1 %931 }
 0x2f2   : > { %v937_v14 = vsel %vm512_vm5, %v932_v13, %v934_v42  ;;  %v1171_v15 = vld [vmem:[#allocation3 + $0x18] sm:$0xff] }
 0x2f3   : > { %941 = vst [vmem:[#allocation3 + $0x30] sm:$0xf0] %v937_v14  ;;  %1217 = vmatpush1.msra.mxu0 %v1171_v15  ;;  %v1337_v42 = vld [vmem:[%s2010_s8 + $0xc8] sm:$0xff] }
 0x2f4   : > { %1518 = vmatprep.subr.mxu1 %v1337_v42 }
 0x2f5   : > { %1519 = vmatpush3.msra.mxu1 %v1321_v43 }
 0x2f6   : > { %v1170_v16 = vld [vmem:[#allocation3] sm:$0xff]  ;;  %1520 = vmatprep.subr.mxu1 %v1336_v44 }
 0x2f7   : > { %1218 = vmatprep.subr.mxu0 %v1170_v16  ;;  %1521 = vmatpush3.msra.mxu1 %v1320_v45 }
 0x2f8   : > { %1522 = vmatprep.subr.mxu1 %v1335_v46 }
 0x2f9   : > { %1523 = vmatpush3.msra.mxu1 %v1319_v47 }
 0x2fa   : > { %v1169_v18 = vld [vmem:[#allocation3 + $0x30] sm:$0xff]  ;;  %v1263_v23 = vpop.permute.xlu0 %1262  ;;  %1524 = vmatprep.subr.mxu1 %v1334_v48 }
 0x2fb   : > { %1219 = vmatpush1.msra.mxu0 %v1169_v18  ;;  %1525 = vmatpush3.msra.mxu1 %v1318_v49 }
 0x2fc   : > { %1502 = vmatmul.mubr.msk.f32.vlgmr.msra.gmra.mxu0 %vm765_vm10, %v1168_v17  ;;  %1526 = vmatprep.subr.mxu1 %v1333_v50 }
 0x2fd   : > { %1527 = vmatpush3.msra.mxu1 %v1317_v51 }
 0x2fe   : > { %v1271_v20 = vpop.permute.xlu1 %1270  ;;  %1528 = vmatprep.subr.mxu1 %v1332_v52 }
 0x2ff   : > { %1529 = vmatpush3.msra.mxu1 %v1316_v53 }
 0x300   : > { %1530 = vmatprep.subr.mxu1 %v1331_v54 }
 0x301   : > { %1531 = vmatpush3.msra.mxu1 %v1315_v55 }
 0x302   : > { %v1888_v21 = vpop.permute.xlu1 %1289  ;;  %1532 = vmatprep.subr.mxu1 %v1330_v56 }
 0x303   : > { %v1299_v22 = vmax.f32 %v1284_v19, %v1888_v21  ;;  %v1292_v60 = vrot.slane %v1888_v21, 4  ;;  %1533 = vmatpush3.msra.mxu1 %v1314_v57 }
 0x304   : > { %1534 = vmatprep.subr.mxu1 %v1329_v58 }
 0x305   : > { %1304 = vrot.lane.b32.xlu1 %v1299_v22, %s1579_s25  ;;  %1535 = vmatpush3.msra.mxu1 %v1313_v59 }
 0x306   : > { %1536 = vmatprep.subr.mxu1 %v1328_v11 }
 0x307   : > { %1537 = vmatpush3.msra.mxu1 %v1312_v62 }
 0x377   : > { %v1305_v4 = vpop.permute.xlu1 %1304 }
 0x378   : > { %v1307_v6 = vrot.slane %v1305_v4, 4 }
 0x3bc   : > { %v1254_v24 = vpop.f32.mrf.mxu0 }
 0x3bd   : > { %v1265_v25 = vmul.f32 %v1263_v23, %v1254_v24 }
 0x3be   : > { %v1256_v26 = vpop.f32.mrf.mxu0 }
 0x3bf   : > { %v1273_v27 = vadd.f32 %v1271_v20, %v1265_v25  ;;  %v1266_v28 = vmul.f32 %v1263_v23, %v1256_v26 }
 0x3c1   : > { %v1274_v32 = vadd.f32 %v1271_v20, %v1266_v28  ;;  %v1275_v8 = vmax.f32 %v1273_v27, 0.0 }
 0x3c3   : > { %v1276_v1 = vmax.f32 %v1274_v32, 0.0 }
 0x3c5   : > { %v1279_v37 = vcombine.low %v1275_v8, %v1276_v1 }
 0x3c7   : > { %1281 = vst [vmem:[#allocation2 + $0x4] sm:$0xff] %v1279_v37  ;;  %1287 = vrot.lane.b32.xlu0 %v1279_v37, %s1578_s24 }
 0x439   : > { %v1288_v61 = vpop.permute.xlu0 %1287 }
 0x43a   : > { %v1291_v63 = vrot.slane %v1288_v61, 4 }
 0x43c   : > { %v1293_v0 = vsel %vm341_vm0, %v1291_v63, %v1292_v60 }
 0x43d   : > { %v1294_v2 = vsel %vm575_vm6, %v1288_v61, %v1293_v0 }
 0x43e   : > { %v1296_v3 = vmax.f32 %v1279_v37, %v1294_v2 }
 0x440   : > { %1302 = vrot.lane.b32.xlu0 %v1296_v3, %s1579_s25 }
 0x4b2   : > { %v1303_v5 = vpop.permute.xlu0 %1302 }
 0x4b3   : > { %v1306_v7 = vrot.slane %v1303_v5, 4 }
 0x4b5   : > { %v1308_v10 = vsel %vm341_vm0, %v1306_v7, %v1307_v6 }
 0x4b6   : > { %v1309_v12 = vsel %vm496_vm8, %v1303_v5, %v1308_v10 }
 0x4b7   : > { %v1311_v13 = vmax.f32 %v1296_v3, %v1309_v12 }
 0x4b9   : > { %v1345_v14 = vcombine.high %v1311_v13, %v1311_v13 }
 0x4bb   : > { %1411 = vmatprep.mubr.f32.mxu1 %v1345_v14 }
 0x4bc   : > { %1412 = vmatmul.mubr.f32.vlgmr.msra.gmra.mxu1 %v1311_v13 }
 0x57c   : > { %v1538_v15 = vpop.f32.mrf.mxu1 }
 0x57e   : > { %v1539_v16 = vpop.f32.mrf.mxu1 }
 0x57f   : > { %v1540_v17 = vadd.f32 %v1539_v16, %v1538_v15 }
 0x581   : > { %1418 = vst.msk [vmem:[%s330_s18] sm:$0xf] %vm1417_vm11, %v1540_v17 }
 0x582 PF: > { %s19_s30 = sadd.s32 1, %s1568_s30  }
 0x583   : > { %p16_p4 = scmp.ge.s32.totalorder %s19_s30, 4  }
 0x585   :  { %18 = sbr.rel (!%p16_p4) target bundleno = 1 (0x1), region = 93 }

</bundles_post_ra>
